<compile_context>
chip_gen: v5e
topology: v5e:2x2
jax: 0.10.0
libtpu: 0.0.40
codegen_flags: <defaults>
</compile_context>

<pallas_src>
import functools

import jax
import jax.numpy as jnp
from jax import lax
from jax.experimental import pallas as pl
from jax.experimental.pallas import tpu as pltpu


def _round_up(a, b):
    return (a + b - 1) // b * b


def _vmem_capacity_bytes():
    try:
        return int(pltpu.get_tpu_info().vmem_capacity_bytes)
    except Exception:
        return 64 << 20  # conservative default (v7x per-TensorCore VMEM)


def qrnn_kernel(x_ref, w_ref, b_ref, h_ref, *scratch, window_size, hidden,
                ndir, hp, unroll):
    """One batch tile.

    x_ref : (TB, S, I)          input tile, original (batch, time, feat) layout
    w_ref : (W, I, 3*ndir*Hp)   per-window-offset gate weights; each
                                (gate, direction) block padded to Hp=128k lanes
    b_ref : (1, 3*ndir*Hp)      fused gate bias (f32)
    h_ref : (TB, S, ndir*H)     output tile
    scratch: 3*ndir VMEM refs of (S, TB, H):
             [f_fwd, zz_fwd, o_fwd, (f_bwd, zz_bwd, o_bwd)]
             where zz = (1 - f) * tanh(z); o is overwritten with h in the loop.
    """
    TB, S, I = x_ref.shape
    H = hidden
    N = 3 * ndir * hp
    # Matches PyTorch stride(): for window_size == 1 the single tap is x[t-1]
    # (pad_length = max(W-1, 1)); intentional.
    pad_length = max(window_size - 1, 1)

    # ---- tile-local batch<->time transpose (in-VMEM; no wrapper HBM pass) ----
    x_tm = jnp.transpose(x_ref[...], (1, 0, 2))          # (S, TB, I)
    x2 = x_tm.reshape(S * TB, I)                         # TB % 8 == 0 -> aligned

    # ---- fused gate projection: one MXU matmul per window tap, combined with
    #      sublane-aligned time-shifted adds (no windowed-x materialization) ----
    acc = None
    for w in range(window_size):
        d = pad_length - w                 # tap w at time t reads x[t - d]
        if d >= S:
            continue                       # contributes only zeros
        p = jnp.dot(x2, w_ref[w], preferred_element_type=jnp.float32)
        if d > 0:                          # shift forward in time by d steps
            p = jnp.concatenate(
                [jnp.zeros((d * TB, N), jnp.float32), p[:(S - d) * TB]], axis=0)
        acc = p if acc is None else acc + p
    if acc is None:
        acc = jnp.zeros((S * TB, N), jnp.float32)
    g = (acc + b_ref[...]).reshape(S, TB, N)             # (S, TB, N)

    sdt = scratch[0].dtype

    # ---- nonlinearities; every slice starts at a 128-aligned lane offset ----
    for d in range(ndir):
        f_s, zz_s, o_s = scratch[3 * d:3 * d + 3]
        z = jnp.tanh(g[..., (0 * ndir + d) * hp:(0 * ndir + d) * hp + H])
        f = jax.nn.sigmoid(g[..., (1 * ndir + d) * hp:(1 * ndir + d) * hp + H])
        o = jax.nn.sigmoid(g[..., (2 * ndir + d) * hp:(2 * ndir + d) * hp + H])
        f_s[...] = f.astype(sdt)
        zz_s[...] = ((1.0 - f) * z).astype(sdt)           # pre-fold (1-f)*z
        o_s[...] = o.astype(sdt)                          # h := sigmoid(o) ...

    f32 = jnp.float32
    c0 = jnp.zeros((TB, H), f32)

    # ---- serial fo-pool recurrence: full-row (TB, H) loads/stores only ----
    if ndir == 2:
        f_f, zz_f, o_f, f_b, zz_b, o_b = scratch

        def body(i, carry):
            cf, cb = carry
            j = S - 1 - i
            cf = f_f[i].astype(f32) * cf + zz_f[i].astype(f32)
            cb = f_b[j].astype(f32) * cb + zz_b[j].astype(f32)
            o_f[i] = (o_f[i].astype(f32) * cf).astype(sdt)   # ... h = o * c
            o_b[j] = (o_b[j].astype(f32) * cb).astype(sdt)
            return cf, cb

        lax.fori_loop(0, S, body, (c0, c0), unroll=unroll)

        # finalize: transpose back to (TB, S, .) and store (one-time pass)
        h_ref[:, :, :H] = jnp.transpose(o_f[...], (1, 0, 2)).astype(h_ref.dtype)
        h_ref[:, :, H:] = jnp.transpose(o_b[...], (1, 0, 2)).astype(h_ref.dtype)
    else:
        f_f, zz_f, o_f = scratch

        def body(i, c):
            c = f_f[i].astype(f32) * c + zz_f[i].astype(f32)
            o_f[i] = (o_f[i].astype(f32) * c).astype(sdt)
            return c

        lax.fori_loop(0, S, body, c0, unroll=unroll)
        h_ref[...] = jnp.transpose(o_f[...], (1, 0, 2)).astype(h_ref.dtype)


def _pick_batch_tile(B, S, I, H, ndir, W, es, ss, budget):
    """Batch tile: multiple of 8 sublanes, sized so the per-tile working set
    (double-buffered x/h blocks, weights, f/zz/o scratch, transient f32 gate
    slabs) fits the capacity-derived budget; >=2 grid steps whenever the batch
    allows (megacore sharding on v7x + in/out pipelining)."""
    Ip = _round_up(max(I, 1), 128)          # lane-padded sizes for honesty
    Hp = _round_up(H, 128)
    HDo = _round_up(ndir * H, 128)
    N = 3 * ndir * Hp
    w_bytes = W * _round_up(I, 8) * N * es + 4 * N
    per_b = S * (3 * Ip * es                # x block (double-buffered) + x_tm
                 + 2 * HDo * es             # h block (double-buffered)
                 + 2 * N * 4                # f32 gate slab + shifted partial
                 + 3 * ndir * Hp * ss)      # f / zz / o scratch (lane-padded)
    tb = (budget - w_bytes) // max(per_b, 1)
    tb = max(8, (tb // 8) * 8)
    b8 = _round_up(B, 8)
    if b8 >= 16:
        tb = min(tb, _round_up(b8 // 2, 8))  # keep >=2 grid steps
    return int(min(tb, b8))


def qrnn_layer_forward(x, weight, bias, *, window_size=2, output_size=32,
                       bidirectional=True, batch_tile=None, scratch_dtype=None):
    """x: (bsz, seq_len, input_size).
    weight: (num_gates*ndir*H, window_size*input_size) torch Linear layout.
    bias:   (num_gates*ndir*H,).

    Compute / IO dtype follows x.dtype (no forced f32 upcast).  scratch_dtype
    optionally overrides the in-kernel f/zz/o scratch dtype (e.g. jnp.bfloat16
    on v5e to relieve vector-store pressure); the recurrence carry and all
    nonlinearities always run in f32."""
    B, S, I = x.shape
    H = output_size
    ndir = 2 if bidirectional else 1
    HD = ndir * H
    Hp = _round_up(H, 128)                  # 128-aligned (gate, dir) columns
    W = window_size
    N = 3 * ndir * Hp

    assert weight.shape == (3 * HD, W * I), weight.shape
    assert bias.shape == (3 * HD,), bias.shape

    cdt = x.dtype
    sdt = jnp.dtype(scratch_dtype) if scratch_dtype is not None else jnp.dtype(cdt)
    es = jnp.dtype(cdt).itemsize
    ss = sdt.itemsize

    # --- VMEM budget derived from the actual chip (128 MiB v5e/v6e, 64 v7x) ---
    vmem_cap = _vmem_capacity_bytes()
    vmem_limit = max(min(int(vmem_cap * 0.8), vmem_cap - (16 << 20)), 16 << 20)
    budget = max(vmem_limit - (4 << 20), 8 << 20)

    if batch_tile is not None:
        TB = _round_up(int(batch_tile), 8)   # must stay sublane-aligned
    else:
        TB = _pick_batch_tile(B, S, I, H, ndir, W, es, ss, budget)

    B_pad = _round_up(B, TB)
    if B_pad != B:
        x = jnp.pad(x, ((0, B_pad - B), (0, 0), (0, 0)))

    # torch Linear weight (3*HD, W*I) -> (W, I, 3*ndir*Hp): per-window-offset
    # slabs with each (gate, direction) column block zero-padded to Hp lanes.
    w5 = weight.reshape(3, ndir, H, W, I)
    w5 = jnp.pad(w5, ((0, 0), (0, 0), (0, Hp - H), (0, 0), (0, 0)))
    w_k = jnp.transpose(w5, (3, 4, 0, 1, 2)).reshape(W, I, N).astype(cdt)
    b_k = jnp.pad(bias.reshape(3, ndir, H), ((0, 0), (0, 0), (0, Hp - H))
                  ).reshape(1, N).astype(jnp.float32)

    # Serial-loop unroll: independent of S divisibility, bounded by vreg
    # pressure (~6 loads + 2 stores of (TB, H) slabs per step).  Sweepable.
    slab_vregs = max(TB // 8, 1) * max(-(-H // 128), 1) * (2 if ndir == 2 else 1)
    unroll = int(max(1, min(S, min(8, max(2, 32 // max(slab_vregs, 1))))))

    kernel = functools.partial(qrnn_kernel, window_size=W, hidden=H,
                               ndir=ndir, hp=Hp, unroll=unroll)

    cost = pl.CostEstimate(
        flops=int(2 * W * S * B_pad * I * N + 10 * S * B_pad * HD),
        transcendentals=int(3 * S * B_pad * HD),
        bytes_accessed=int(es * S * B_pad * (I + HD) + es * W * I * N + 4 * N),
    )

    h = pl.pallas_call(
        kernel,
        out_shape=jax.ShapeDtypeStruct((B_pad, S, HD), cdt),
        grid=(B_pad // TB,),
        in_specs=[
            pl.BlockSpec((TB, S, I), lambda b: (b, 0, 0)),
            pl.BlockSpec((W, I, N), lambda b: (0, 0, 0)),
            pl.BlockSpec((1, N), lambda b: (0, 0)),
        ],
        out_specs=pl.BlockSpec((TB, S, HD), lambda b: (b, 0, 0)),
        scratch_shapes=[pltpu.VMEM((S, TB, H), sdt) for _ in range(3 * ndir)],
        compiler_params=pltpu.CompilerParams(
            dimension_semantics=("parallel",),
            vmem_limit_bytes=int(vmem_limit),
        ),
        cost_estimate=cost,
    )(x, w_k, b_k)

    return h[:B]                                           # (B, S, HD)


# ----------------------------- pure-JAX reference -----------------------------

def _window(x, window_size):
    """Replicates QRNNLayer.stride(): lookback window of size `window_size`."""
    B, S, I = x.shape
    pad_length = max(window_size - 1, 1)
    xp = jnp.pad(x, ((0, 0), (pad_length, 0), (0, 0)))
    return jnp.concatenate([xp[:, w:w + S, :] for w in range(window_size)],
                           axis=-1)


def qrnn_reference(x, weight, bias, *, window_size=2, output_size=32,
                   bidirectional=True):
    B, S, I = x.shape
    H = output_size
    xw = _window(x, window_size)
    g = xw @ weight.T + bias
    z, f, o = jnp.split(g, 3, axis=-1)
    z = jnp.tanh(z)
    f = jax.nn.sigmoid(f)
    o = jax.nn.sigmoid(o)

    def step(c_prev, inp):
        f_t, z_t = inp
        c = f_t * c_prev + (1.0 - f_t) * z_t
        return c, c

    if bidirectional:
        zr = jnp.transpose(z.reshape(B, S, 2, H), (1, 0, 2, 3))
        fr = jnp.transpose(f.reshape(B, S, 2, H), (1, 0, 2, 3))
        _, c_fwd = lax.scan(step, jnp.zeros((B, H)), (fr[:, :, 0], zr[:, :, 0]))
        _, c_bwd = lax.scan(step, jnp.zeros((B, H)), (fr[:, :, 1], zr[:, :, 1]),
                            reverse=True)
        c = jnp.concatenate([jnp.transpose(c_fwd, (1, 0, 2)),
                             jnp.transpose(c_bwd, (1, 0, 2))], axis=-1)
    else:
        f_tm = jnp.transpose(f, (1, 0, 2))
        z_tm = jnp.transpose(z, (1, 0, 2))
        _, c_s = lax.scan(step, jnp.zeros((B, H)), (f_tm, z_tm))
        c = jnp.transpose(c_s, (1, 0, 2))
    return o * c


# TODO(synk): forward_packed_sequence (PackedSequence input) has no Pallas
# equivalent (the PyTorch method only prints the input); tensor path only.

if __name__ == "__main__":
    B, S, I, H = 2, 8, 4, 32
    W = 2

    key = jax.random.PRNGKey(0)
    k_x, k_w, k_b, k_w1, k_b1 = jax.random.split(key, 5)

    x = jax.random.normal(k_x, (B, S, I), dtype=jnp.float32)

    in_features = W * I
    bound = float(1.0 / (in_features ** 0.5))

    # --- bidirectional (module default), f32 ---
    out_features = 2 * H * 3
    weight = jax.random.uniform(k_w, (out_features, in_features), jnp.float32,
                                -bound, bound)
    bias = jax.random.uniform(k_b, (out_features,), jnp.float32, -bound, bound)

    h = qrnn_layer_forward(x, weight, bias, window_size=W, output_size=H,
                           bidirectional=True)
    h = jax.block_until_ready(h)
    h_ref = qrnn_reference(x, weight, bias, window_size=W, output_size=H,
                           bidirectional=True)
    assert h.shape == (B, S, 2 * H), h.shape
    if not bool(jnp.allclose(h, h_ref, atol=1e-5, rtol=1e-5)):
        raise AssertionError(
            "bidirectional mismatch, max abs err = %g"
            % float(jnp.max(jnp.abs(h - h_ref))))

    # --- unidirectional, f32 ---
    out_features1 = H * 3
    weight1 = jax.random.uniform(k_w1, (out_features1, in_features),
                                 jnp.float32, -bound, bound)
    bias1 = jax.random.uniform(k_b1, (out_features1,), jnp.float32,
                               -bound, bound)
    h1 = qrnn_layer_forward(x, weight1, bias1, window_size=W, output_size=H,
                            bidirectional=False)
    h1 = jax.block_until_ready(h1)
    h1_ref = qrnn_reference(x, weight1, bias1, window_size=W, output_size=H,
                            bidirectional=False)
    assert h1.shape == (B, S, H), h1.shape
    if not bool(jnp.allclose(h1, h1_ref, atol=1e-5, rtol=1e-5)):
        raise AssertionError(
            "unidirectional mismatch, max abs err = %g"
            % float(jnp.max(jnp.abs(h1 - h1_ref))))

    # --- bf16 I/O path (half the HBM traffic; activations/carry stay f32) ---
    hb = qrnn_layer_forward(x.astype(jnp.bfloat16), weight, bias,
                            window_size=W, output_size=H, bidirectional=True)
    hb = jax.block_until_ready(hb)
    assert hb.dtype == jnp.bfloat16 and hb.shape == (B, S, 2 * H)
    if not bool(jnp.allclose(hb.astype(jnp.float32), h_ref, atol=1e-1)):
        raise AssertionError(
            "bf16 mismatch, max abs err = %g"
            % float(jnp.max(jnp.abs(hb.astype(jnp.float32) - h_ref))))

    print("KERNEL_OK")
</pallas_src>

<mosaic_0001>
module attributes {stable_mosaic.version = 11 : i64} {
  func.func @qrnn_kernel(%arg0: i32, %arg1: memref<8x8x4xf32, #tpu.memory_space<vmem>>, %arg2: memref<2x4x768xf32, #tpu.memory_space<vmem>>, %arg3: memref<1x768xf32, #tpu.memory_space<vmem>>, %arg4: memref<8x8x64xf32, #tpu.memory_space<vmem>>, %arg5: memref<8x8x32xf32, #tpu.memory_space<vmem>>, %arg6: memref<8x8x32xf32, #tpu.memory_space<vmem>>, %arg7: memref<8x8x32xf32, #tpu.memory_space<vmem>>, %arg8: memref<8x8x32xf32, #tpu.memory_space<vmem>>, %arg9: memref<8x8x32xf32, #tpu.memory_space<vmem>>, %arg10: memref<8x8x32xf32, #tpu.memory_space<vmem>>) attributes {dimension_semantics = [#tpu.dimension_semantics<parallel>], iteration_bounds = array<i64: 1>, scalar_prefetch = 0 : i64, scratch_operands = 6 : i64, tpu.core_type = #tpu.core_type<tc>, window_params = [{transform_indices = @transform_0, window_bounds = array<i64: 8, 8, 4>}, {pipeline_mode = #tpu.pipeline_mode<synchronous>, transform_indices = @transform_1, window_bounds = array<i64: 2, 4, 768>}, {pipeline_mode = #tpu.pipeline_mode<synchronous>, transform_indices = @transform_2, window_bounds = array<i64: 1, 768>}, {transform_indices = @transform_3, window_bounds = array<i64: 8, 8, 64>}]} {
    %c0 = arith.constant 0 : index
    %c0_0 = arith.constant 0 : index
    %c0_1 = arith.constant 0 : index
    %0 = vector.load %arg1[%c0, %c0_0, %c0_1] : memref<8x8x4xf32, #tpu.memory_space<vmem>>, vector<8x8x4xf32>
    %1 = tpu.transpose %0, [1, 0, 2] : vector<8x8x4xf32> -> vector<8x8x4xf32>
    %2 = vector.shape_cast %1 : vector<8x8x4xf32> to vector<64x4xf32>
    %c0_2 = arith.constant 0 : index
    %c0_3 = arith.constant 0 : index
    %c0_4 = arith.constant 0 : index
    %3 = vector.load %arg2[%c0_2, %c0_3, %c0_4] : memref<2x4x768xf32, #tpu.memory_space<vmem>>, vector<1x4x768xf32>
    %4 = vector.shape_cast %3 : vector<1x4x768xf32> to vector<4x768xf32>
    %cst = arith.constant dense<0.000000e+00> : vector<64x768xf32>
    %5 = tpu.matmul %2, %4, %cst {dimension_numbers = #tpu.dot_dimension_numbers<[1], [0], [0], [1], [0, 0, 1, 1], [], []>} : vector<64x4xf32>, vector<4x768xf32>, vector<64x768xf32> -> vector<64x768xf32>
    %cst_5 = arith.constant 0.000000e+00 : f32
    %6 = vector.broadcast %cst_5 : f32 to vector<8x768xf32>
    %7 = vector.extract_strided_slice %5 {offsets = [0, 0], sizes = [56, 768], strides = [1, 1]} : vector<64x768xf32> to vector<56x768xf32>
    %8 = tpu.concatenate %6, %7 in 0 : vector<8x768xf32>, vector<56x768xf32> -> vector<64x768xf32>
    %c1 = arith.constant 1 : index
    %c0_6 = arith.constant 0 : index
    %c0_7 = arith.constant 0 : index
    %9 = vector.load %arg2[%c1, %c0_6, %c0_7] : memref<2x4x768xf32, #tpu.memory_space<vmem>>, vector<1x4x768xf32>
    %10 = vector.shape_cast %9 : vector<1x4x768xf32> to vector<4x768xf32>
    %cst_8 = arith.constant dense<0.000000e+00> : vector<64x768xf32>
    %11 = tpu.matmul %2, %10, %cst_8 {dimension_numbers = #tpu.dot_dimension_numbers<[1], [0], [0], [1], [0, 0, 1, 1], [], []>} : vector<64x4xf32>, vector<4x768xf32>, vector<64x768xf32> -> vector<64x768xf32>
    %12 = arith.addf %8, %11 : vector<64x768xf32>
    %c0_9 = arith.constant 0 : index
    %c0_10 = arith.constant 0 : index
    %13 = vector.load %arg3[%c0_9, %c0_10] : memref<1x768xf32, #tpu.memory_space<vmem>>, vector<1x768xf32>
    %14 = vector.broadcast %13 : vector<1x768xf32> to vector<64x768xf32>
    %15 = arith.addf %12, %14 : vector<64x768xf32>
    %16 = vector.shape_cast %15 : vector<64x768xf32> to vector<8x8x768xf32>
    %17 = vector.extract_strided_slice %16 {offsets = [0, 0, 0], sizes = [8, 8, 32], strides = [1, 1, 1]} : vector<8x8x768xf32> to vector<8x8x32xf32>
    %18 = math.tanh %17 : vector<8x8x32xf32>
    %19 = vector.extract_strided_slice %16 {offsets = [0, 0, 256], sizes = [8, 8, 32], strides = [1, 1, 1]} : vector<8x8x768xf32> to vector<8x8x32xf32>
    %20 = arith.negf %19 : vector<8x8x32xf32>
    %21 = math.exp %20 : vector<8x8x32xf32>
    %cst_11 = arith.constant 1.000000e+00 : f32
    %22 = vector.broadcast %cst_11 : f32 to vector<8x8x32xf32>
    %23 = arith.addf %22, %21 : vector<8x8x32xf32>
    %24 = arith.divf %22, %23 : vector<8x8x32xf32>
    %25 = vector.extract_strided_slice %16 {offsets = [0, 0, 512], sizes = [8, 8, 32], strides = [1, 1, 1]} : vector<8x8x768xf32> to vector<8x8x32xf32>
    %26 = arith.negf %25 : vector<8x8x32xf32>
    %27 = math.exp %26 : vector<8x8x32xf32>
    %cst_12 = arith.constant 1.000000e+00 : f32
    %28 = vector.broadcast %cst_12 : f32 to vector<8x8x32xf32>
    %29 = arith.addf %28, %27 : vector<8x8x32xf32>
    %30 = arith.divf %28, %29 : vector<8x8x32xf32>
    %c0_13 = arith.constant 0 : index
    %c0_14 = arith.constant 0 : index
    %c0_15 = arith.constant 0 : index
    %31 = vector.load %arg5[%c0_13, %c0_14, %c0_15] : memref<8x8x32xf32, #tpu.memory_space<vmem>>, vector<8x8x32xf32>
    tpu.vector_store %arg5[%c0_13, %c0_14, %c0_15], %24 {strides = array<i32>} : memref<8x8x32xf32, #tpu.memory_space<vmem>>, vector<8x8x32xf32>,
    %cst_16 = arith.constant 1.000000e+00 : f32
    %32 = vector.broadcast %cst_16 : f32 to vector<8x8x32xf32>
    %33 = arith.subf %32, %24 : vector<8x8x32xf32>
    %34 = arith.mulf %33, %18 : vector<8x8x32xf32>
    %c0_17 = arith.constant 0 : index
    %c0_18 = arith.constant 0 : index
    %c0_19 = arith.constant 0 : index
    %35 = vector.load %arg6[%c0_17, %c0_18, %c0_19] : memref<8x8x32xf32, #tpu.memory_space<vmem>>, vector<8x8x32xf32>
    tpu.vector_store %arg6[%c0_17, %c0_18, %c0_19], %34 {strides = array<i32>} : memref<8x8x32xf32, #tpu.memory_space<vmem>>, vector<8x8x32xf32>,
    %c0_20 = arith.constant 0 : index
    %c0_21 = arith.constant 0 : index
    %c0_22 = arith.constant 0 : index
    %36 = vector.load %arg7[%c0_20, %c0_21, %c0_22] : memref<8x8x32xf32, #tpu.memory_space<vmem>>, vector<8x8x32xf32>
    tpu.vector_store %arg7[%c0_20, %c0_21, %c0_22], %30 {strides = array<i32>} : memref<8x8x32xf32, #tpu.memory_space<vmem>>, vector<8x8x32xf32>,
    %37 = vector.extract_strided_slice %16 {offsets = [0, 0, 128], sizes = [8, 8, 32], strides = [1, 1, 1]} : vector<8x8x768xf32> to vector<8x8x32xf32>
    %38 = math.tanh %37 : vector<8x8x32xf32>
    %39 = vector.extract_strided_slice %16 {offsets = [0, 0, 384], sizes = [8, 8, 32], strides = [1, 1, 1]} : vector<8x8x768xf32> to vector<8x8x32xf32>
    %40 = arith.negf %39 : vector<8x8x32xf32>
    %41 = math.exp %40 : vector<8x8x32xf32>
    %cst_23 = arith.constant 1.000000e+00 : f32
    %42 = vector.broadcast %cst_23 : f32 to vector<8x8x32xf32>
    %43 = arith.addf %42, %41 : vector<8x8x32xf32>
    %44 = arith.divf %42, %43 : vector<8x8x32xf32>
    %45 = vector.extract_strided_slice %16 {offsets = [0, 0, 640], sizes = [8, 8, 32], strides = [1, 1, 1]} : vector<8x8x768xf32> to vector<8x8x32xf32>
    %46 = arith.negf %45 : vector<8x8x32xf32>
    %47 = math.exp %46 : vector<8x8x32xf32>
    %cst_24 = arith.constant 1.000000e+00 : f32
    %48 = vector.broadcast %cst_24 : f32 to vector<8x8x32xf32>
    %49 = arith.addf %48, %47 : vector<8x8x32xf32>
    %50 = arith.divf %48, %49 : vector<8x8x32xf32>
    %c0_25 = arith.constant 0 : index
    %c0_26 = arith.constant 0 : index
    %c0_27 = arith.constant 0 : index
    %51 = vector.load %arg8[%c0_25, %c0_26, %c0_27] : memref<8x8x32xf32, #tpu.memory_space<vmem>>, vector<8x8x32xf32>
    tpu.vector_store %arg8[%c0_25, %c0_26, %c0_27], %44 {strides = array<i32>} : memref<8x8x32xf32, #tpu.memory_space<vmem>>, vector<8x8x32xf32>,
    %cst_28 = arith.constant 1.000000e+00 : f32
    %52 = vector.broadcast %cst_28 : f32 to vector<8x8x32xf32>
    %53 = arith.subf %52, %44 : vector<8x8x32xf32>
    %54 = arith.mulf %53, %38 : vector<8x8x32xf32>
    %c0_29 = arith.constant 0 : index
    %c0_30 = arith.constant 0 : index
    %c0_31 = arith.constant 0 : index
    %55 = vector.load %arg9[%c0_29, %c0_30, %c0_31] : memref<8x8x32xf32, #tpu.memory_space<vmem>>, vector<8x8x32xf32>
    tpu.vector_store %arg9[%c0_29, %c0_30, %c0_31], %54 {strides = array<i32>} : memref<8x8x32xf32, #tpu.memory_space<vmem>>, vector<8x8x32xf32>,
    %c0_32 = arith.constant 0 : index
    %c0_33 = arith.constant 0 : index
    %c0_34 = arith.constant 0 : index
    %56 = vector.load %arg10[%c0_32, %c0_33, %c0_34] : memref<8x8x32xf32, #tpu.memory_space<vmem>>, vector<8x8x32xf32>
    tpu.vector_store %arg10[%c0_32, %c0_33, %c0_34], %50 {strides = array<i32>} : memref<8x8x32xf32, #tpu.memory_space<vmem>>, vector<8x8x32xf32>,
    %cst_35 = arith.constant 0.000000e+00 : f32
    %57 = vector.broadcast %cst_35 : f32 to vector<8x32xf32>
    %c0_i32 = arith.constant 0 : i32
    %c7_i32 = arith.constant 7 : i32
    %58 = arith.subi %c7_i32, %c0_i32 : i32
    %59 = arith.index_cast %c0_i32 : i32 to index
    %c0_36 = arith.constant 0 : index
    %c0_37 = arith.constant 0 : index
    %60 = vector.load %arg5[%59, %c0_36, %c0_37] : memref<8x8x32xf32, #tpu.memory_space<vmem>>, vector<1x8x32xf32>
    %61 = vector.shape_cast %60 : vector<1x8x32xf32> to vector<8x32xf32>
    %62 = arith.mulf %61, %57 : vector<8x32xf32>
    %63 = arith.index_cast %c0_i32 : i32 to index
    %c0_38 = arith.constant 0 : index
    %c0_39 = arith.constant 0 : index
    %64 = vector.load %arg6[%63, %c0_38, %c0_39] : memref<8x8x32xf32, #tpu.memory_space<vmem>>, vector<1x8x32xf32>
    %65 = vector.shape_cast %64 : vector<1x8x32xf32> to vector<8x32xf32>
    %66 = arith.addf %62, %65 : vector<8x32xf32>
    %67 = arith.index_cast %58 : i32 to index
    %c0_40 = arith.constant 0 : index
    %c0_41 = arith.constant 0 : index
    %68 = vector.load %arg8[%67, %c0_40, %c0_41] : memref<8x8x32xf32, #tpu.memory_space<vmem>>, vector<1x8x32xf32>
    %69 = vector.shape_cast %68 : vector<1x8x32xf32> to vector<8x32xf32>
    %70 = arith.mulf %69, %57 : vector<8x32xf32>
    %71 = arith.index_cast %58 : i32 to index
    %c0_42 = arith.constant 0 : index
    %c0_43 = arith.constant 0 : index
    %72 = vector.load %arg9[%71, %c0_42, %c0_43] : memref<8x8x32xf32, #tpu.memory_space<vmem>>, vector<1x8x32xf32>
    %73 = vector.shape_cast %72 : vector<1x8x32xf32> to vector<8x32xf32>
    %74 = arith.addf %70, %73 : vector<8x32xf32>
    %75 = arith.index_cast %c0_i32 : i32 to index
    %c0_44 = arith.constant 0 : index
    %c0_45 = arith.constant 0 : index
    %76 = vector.load %arg7[%75, %c0_44, %c0_45] : memref<8x8x32xf32, #tpu.memory_space<vmem>>, vector<1x8x32xf32>
    %77 = vector.shape_cast %76 : vector<1x8x32xf32> to vector<8x32xf32>
    %78 = arith.mulf %77, %66 : vector<8x32xf32>
    %79 = arith.index_cast %c0_i32 : i32 to index
    %c0_46 = arith.constant 0 : index
    %c0_47 = arith.constant 0 : index
    %80 = vector.load %arg7[%79, %c0_46, %c0_47] : memref<8x8x32xf32, #tpu.memory_space<vmem>>, vector<1x8x32xf32>
    %81 = vector.shape_cast %80 : vector<1x8x32xf32> to vector<8x32xf32>
    %82 = vector.shape_cast %78 : vector<8x32xf32> to vector<1x8x32xf32>
    tpu.vector_store %arg7[%79, %c0_46, %c0_47], %82 {strides = array<i32>} : memref<8x8x32xf32, #tpu.memory_space<vmem>>, vector<1x8x32xf32>,
    %83 = arith.index_cast %58 : i32 to index
    %c0_48 = arith.constant 0 : index
    %c0_49 = arith.constant 0 : index
    %84 = vector.load %arg10[%83, %c0_48, %c0_49] : memref<8x8x32xf32, #tpu.memory_space<vmem>>, vector<1x8x32xf32>
    %85 = vector.shape_cast %84 : vector<1x8x32xf32> to vector<8x32xf32>
    %86 = arith.mulf %85, %74 : vector<8x32xf32>
    %87 = arith.index_cast %58 : i32 to index
    %c0_50 = arith.constant 0 : index
    %c0_51 = arith.constant 0 : index
    %88 = vector.load %arg10[%87, %c0_50, %c0_51] : memref<8x8x32xf32, #tpu.memory_space<vmem>>, vector<1x8x32xf32>
    %89 = vector.shape_cast %88 : vector<1x8x32xf32> to vector<8x32xf32>
    %90 = vector.shape_cast %86 : vector<8x32xf32> to vector<1x8x32xf32>
    tpu.vector_store %arg10[%87, %c0_50, %c0_51], %90 {strides = array<i32>} : memref<8x8x32xf32, #tpu.memory_space<vmem>>, vector<1x8x32xf32>,
    %c1_i32 = arith.constant 1 : i32
    %c7_i32_52 = arith.constant 7 : i32
    %91 = arith.subi %c7_i32_52, %c1_i32 : i32
    %92 = arith.index_cast %c1_i32 : i32 to index
    %c0_53 = arith.constant 0 : index
    %c0_54 = arith.constant 0 : index
    %93 = vector.load %arg5[%92, %c0_53, %c0_54] : memref<8x8x32xf32, #tpu.memory_space<vmem>>, vector<1x8x32xf32>
    %94 = vector.shape_cast %93 : vector<1x8x32xf32> to vector<8x32xf32>
    %95 = arith.mulf %94, %66 : vector<8x32xf32>
    %96 = arith.index_cast %c1_i32 : i32 to index
    %c0_55 = arith.constant 0 : index
    %c0_56 = arith.constant 0 : index
    %97 = vector.load %arg6[%96, %c0_55, %c0_56] : memref<8x8x32xf32, #tpu.memory_space<vmem>>, vector<1x8x32xf32>
    %98 = vector.shape_cast %97 : vector<1x8x32xf32> to vector<8x32xf32>
    %99 = arith.addf %95, %98 : vector<8x32xf32>
    %100 = arith.index_cast %91 : i32 to index
    %c0_57 = arith.constant 0 : index
    %c0_58 = arith.constant 0 : index
    %101 = vector.load %arg8[%100, %c0_57, %c0_58] : memref<8x8x32xf32, #tpu.memory_space<vmem>>, vector<1x8x32xf32>
    %102 = vector.shape_cast %101 : vector<1x8x32xf32> to vector<8x32xf32>
    %103 = arith.mulf %102, %74 : vector<8x32xf32>
    %104 = arith.index_cast %91 : i32 to index
    %c0_59 = arith.constant 0 : index
    %c0_60 = arith.constant 0 : index
    %105 = vector.load %arg9[%104, %c0_59, %c0_60] : memref<8x8x32xf32, #tpu.memory_space<vmem>>, vector<1x8x32xf32>
    %106 = vector.shape_cast %105 : vector<1x8x32xf32> to vector<8x32xf32>
    %107 = arith.addf %103, %106 : vector<8x32xf32>
    %108 = arith.index_cast %c1_i32 : i32 to index
    %c0_61 = arith.constant 0 : index
    %c0_62 = arith.constant 0 : index
    %109 = vector.load %arg7[%108, %c0_61, %c0_62] : memref<8x8x32xf32, #tpu.memory_space<vmem>>, vector<1x8x32xf32>
    %110 = vector.shape_cast %109 : vector<1x8x32xf32> to vector<8x32xf32>
    %111 = arith.mulf %110, %99 : vector<8x32xf32>
    %112 = arith.index_cast %c1_i32 : i32 to index
    %c0_63 = arith.constant 0 : index
    %c0_64 = arith.constant 0 : index
    %113 = vector.load %arg7[%112, %c0_63, %c0_64] : memref<8x8x32xf32, #tpu.memory_space<vmem>>, vector<1x8x32xf32>
    %114 = vector.shape_cast %113 : vector<1x8x32xf32> to vector<8x32xf32>
    %115 = vector.shape_cast %111 : vector<8x32xf32> to vector<1x8x32xf32>
    tpu.vector_store %arg7[%112, %c0_63, %c0_64], %115 {strides = array<i32>} : memref<8x8x32xf32, #tpu.memory_space<vmem>>, vector<1x8x32xf32>,
    %116 = arith.index_cast %91 : i32 to index
    %c0_65 = arith.constant 0 : index
    %c0_66 = arith.constant 0 : index
    %117 = vector.load %arg10[%116, %c0_65, %c0_66] : memref<8x8x32xf32, #tpu.memory_space<vmem>>, vector<1x8x32xf32>
    %118 = vector.shape_cast %117 : vector<1x8x32xf32> to vector<8x32xf32>
    %119 = arith.mulf %118, %107 : vector<8x32xf32>
    %120 = arith.index_cast %91 : i32 to index
    %c0_67 = arith.constant 0 : index
    %c0_68 = arith.constant 0 : index
    %121 = vector.load %arg10[%120, %c0_67, %c0_68] : memref<8x8x32xf32, #tpu.memory_space<vmem>>, vector<1x8x32xf32>
    %122 = vector.shape_cast %121 : vector<1x8x32xf32> to vector<8x32xf32>
    %123 = vector.shape_cast %119 : vector<8x32xf32> to vector<1x8x32xf32>
    tpu.vector_store %arg10[%120, %c0_67, %c0_68], %123 {strides = array<i32>} : memref<8x8x32xf32, #tpu.memory_space<vmem>>, vector<1x8x32xf32>,
    %c2_i32 = arith.constant 2 : i32
    %c7_i32_69 = arith.constant 7 : i32
    %124 = arith.subi %c7_i32_69, %c2_i32 : i32
    %125 = arith.index_cast %c2_i32 : i32 to index
    %c0_70 = arith.constant 0 : index
    %c0_71 = arith.constant 0 : index
    %126 = vector.load %arg5[%125, %c0_70, %c0_71] : memref<8x8x32xf32, #tpu.memory_space<vmem>>, vector<1x8x32xf32>
    %127 = vector.shape_cast %126 : vector<1x8x32xf32> to vector<8x32xf32>
    %128 = arith.mulf %127, %99 : vector<8x32xf32>
    %129 = arith.index_cast %c2_i32 : i32 to index
    %c0_72 = arith.constant 0 : index
    %c0_73 = arith.constant 0 : index
    %130 = vector.load %arg6[%129, %c0_72, %c0_73] : memref<8x8x32xf32, #tpu.memory_space<vmem>>, vector<1x8x32xf32>
    %131 = vector.shape_cast %130 : vector<1x8x32xf32> to vector<8x32xf32>
    %132 = arith.addf %128, %131 : vector<8x32xf32>
    %133 = arith.index_cast %124 : i32 to index
    %c0_74 = arith.constant 0 : index
    %c0_75 = arith.constant 0 : index
    %134 = vector.load %arg8[%133, %c0_74, %c0_75] : memref<8x8x32xf32, #tpu.memory_space<vmem>>, vector<1x8x32xf32>
    %135 = vector.shape_cast %134 : vector<1x8x32xf32> to vector<8x32xf32>
    %136 = arith.mulf %135, %107 : vector<8x32xf32>
    %137 = arith.index_cast %124 : i32 to index
    %c0_76 = arith.constant 0 : index
    %c0_77 = arith.constant 0 : index
    %138 = vector.load %arg9[%137, %c0_76, %c0_77] : memref<8x8x32xf32, #tpu.memory_space<vmem>>, vector<1x8x32xf32>
    %139 = vector.shape_cast %138 : vector<1x8x32xf32> to vector<8x32xf32>
    %140 = arith.addf %136, %139 : vector<8x32xf32>
    %141 = arith.index_cast %c2_i32 : i32 to index
    %c0_78 = arith.constant 0 : index
    %c0_79 = arith.constant 0 : index
    %142 = vector.load %arg7[%141, %c0_78, %c0_79] : memref<8x8x32xf32, #tpu.memory_space<vmem>>, vector<1x8x32xf32>
    %143 = vector.shape_cast %142 : vector<1x8x32xf32> to vector<8x32xf32>
    %144 = arith.mulf %143, %132 : vector<8x32xf32>
    %145 = arith.index_cast %c2_i32 : i32 to index
    %c0_80 = arith.constant 0 : index
    %c0_81 = arith.constant 0 : index
    %146 = vector.load %arg7[%145, %c0_80, %c0_81] : memref<8x8x32xf32, #tpu.memory_space<vmem>>, vector<1x8x32xf32>
    %147 = vector.shape_cast %146 : vector<1x8x32xf32> to vector<8x32xf32>
    %148 = vector.shape_cast %144 : vector<8x32xf32> to vector<1x8x32xf32>
    tpu.vector_store %arg7[%145, %c0_80, %c0_81], %148 {strides = array<i32>} : memref<8x8x32xf32, #tpu.memory_space<vmem>>, vector<1x8x32xf32>,
    %149 = arith.index_cast %124 : i32 to index
    %c0_82 = arith.constant 0 : index
    %c0_83 = arith.constant 0 : index
    %150 = vector.load %arg10[%149, %c0_82, %c0_83] : memref<8x8x32xf32, #tpu.memory_space<vmem>>, vector<1x8x32xf32>
    %151 = vector.shape_cast %150 : vector<1x8x32xf32> to vector<8x32xf32>
    %152 = arith.mulf %151, %140 : vector<8x32xf32>
    %153 = arith.index_cast %124 : i32 to index
    %c0_84 = arith.constant 0 : index
    %c0_85 = arith.constant 0 : index
    %154 = vector.load %arg10[%153, %c0_84, %c0_85] : memref<8x8x32xf32, #tpu.memory_space<vmem>>, vector<1x8x32xf32>
    %155 = vector.shape_cast %154 : vector<1x8x32xf32> to vector<8x32xf32>
    %156 = vector.shape_cast %152 : vector<8x32xf32> to vector<1x8x32xf32>
    tpu.vector_store %arg10[%153, %c0_84, %c0_85], %156 {strides = array<i32>} : memref<8x8x32xf32, #tpu.memory_space<vmem>>, vector<1x8x32xf32>,
    %c3_i32 = arith.constant 3 : i32
    %c7_i32_86 = arith.constant 7 : i32
    %157 = arith.subi %c7_i32_86, %c3_i32 : i32
    %158 = arith.index_cast %c3_i32 : i32 to index
    %c0_87 = arith.constant 0 : index
    %c0_88 = arith.constant 0 : index
    %159 = vector.load %arg5[%158, %c0_87, %c0_88] : memref<8x8x32xf32, #tpu.memory_space<vmem>>, vector<1x8x32xf32>
    %160 = vector.shape_cast %159 : vector<1x8x32xf32> to vector<8x32xf32>
    %161 = arith.mulf %160, %132 : vector<8x32xf32>
    %162 = arith.index_cast %c3_i32 : i32 to index
    %c0_89 = arith.constant 0 : index
    %c0_90 = arith.constant 0 : index
    %163 = vector.load %arg6[%162, %c0_89, %c0_90] : memref<8x8x32xf32, #tpu.memory_space<vmem>>, vector<1x8x32xf32>
    %164 = vector.shape_cast %163 : vector<1x8x32xf32> to vector<8x32xf32>
    %165 = arith.addf %161, %164 : vector<8x32xf32>
    %166 = arith.index_cast %157 : i32 to index
    %c0_91 = arith.constant 0 : index
    %c0_92 = arith.constant 0 : index
    %167 = vector.load %arg8[%166, %c0_91, %c0_92] : memref<8x8x32xf32, #tpu.memory_space<vmem>>, vector<1x8x32xf32>
    %168 = vector.shape_cast %167 : vector<1x8x32xf32> to vector<8x32xf32>
    %169 = arith.mulf %168, %140 : vector<8x32xf32>
    %170 = arith.index_cast %157 : i32 to index
    %c0_93 = arith.constant 0 : index
    %c0_94 = arith.constant 0 : index
    %171 = vector.load %arg9[%170, %c0_93, %c0_94] : memref<8x8x32xf32, #tpu.memory_space<vmem>>, vector<1x8x32xf32>
    %172 = vector.shape_cast %171 : vector<1x8x32xf32> to vector<8x32xf32>
    %173 = arith.addf %169, %172 : vector<8x32xf32>
    %174 = arith.index_cast %c3_i32 : i32 to index
    %c0_95 = arith.constant 0 : index
    %c0_96 = arith.constant 0 : index
    %175 = vector.load %arg7[%174, %c0_95, %c0_96] : memref<8x8x32xf32, #tpu.memory_space<vmem>>, vector<1x8x32xf32>
    %176 = vector.shape_cast %175 : vector<1x8x32xf32> to vector<8x32xf32>
    %177 = arith.mulf %176, %165 : vector<8x32xf32>
    %178 = arith.index_cast %c3_i32 : i32 to index
    %c0_97 = arith.constant 0 : index
    %c0_98 = arith.constant 0 : index
    %179 = vector.load %arg7[%178, %c0_97, %c0_98] : memref<8x8x32xf32, #tpu.memory_space<vmem>>, vector<1x8x32xf32>
    %180 = vector.shape_cast %179 : vector<1x8x32xf32> to vector<8x32xf32>
    %181 = vector.shape_cast %177 : vector<8x32xf32> to vector<1x8x32xf32>
    tpu.vector_store %arg7[%178, %c0_97, %c0_98], %181 {strides = array<i32>} : memref<8x8x32xf32, #tpu.memory_space<vmem>>, vector<1x8x32xf32>,
    %182 = arith.index_cast %157 : i32 to index
    %c0_99 = arith.constant 0 : index
    %c0_100 = arith.constant 0 : index
    %183 = vector.load %arg10[%182, %c0_99, %c0_100] : memref<8x8x32xf32, #tpu.memory_space<vmem>>, vector<1x8x32xf32>
    %184 = vector.shape_cast %183 : vector<1x8x32xf32> to vector<8x32xf32>
    %185 = arith.mulf %184, %173 : vector<8x32xf32>
    %186 = arith.index_cast %157 : i32 to index
    %c0_101 = arith.constant 0 : index
    %c0_102 = arith.constant 0 : index
    %187 = vector.load %arg10[%186, %c0_101, %c0_102] : memref<8x8x32xf32, #tpu.memory_space<vmem>>, vector<1x8x32xf32>
    %188 = vector.shape_cast %187 : vector<1x8x32xf32> to vector<8x32xf32>
    %189 = vector.shape_cast %185 : vector<8x32xf32> to vector<1x8x32xf32>
    tpu.vector_store %arg10[%186, %c0_101, %c0_102], %189 {strides = array<i32>} : memref<8x8x32xf32, #tpu.memory_space<vmem>>, vector<1x8x32xf32>,
    %c4_i32 = arith.constant 4 : i32
    %c7_i32_103 = arith.constant 7 : i32
    %190 = arith.subi %c7_i32_103, %c4_i32 : i32
    %191 = arith.index_cast %c4_i32 : i32 to index
    %c0_104 = arith.constant 0 : index
    %c0_105 = arith.constant 0 : index
    %192 = vector.load %arg5[%191, %c0_104, %c0_105] : memref<8x8x32xf32, #tpu.memory_space<vmem>>, vector<1x8x32xf32>
    %193 = vector.shape_cast %192 : vector<1x8x32xf32> to vector<8x32xf32>
    %194 = arith.mulf %193, %165 : vector<8x32xf32>
    %195 = arith.index_cast %c4_i32 : i32 to index
    %c0_106 = arith.constant 0 : index
    %c0_107 = arith.constant 0 : index
    %196 = vector.load %arg6[%195, %c0_106, %c0_107] : memref<8x8x32xf32, #tpu.memory_space<vmem>>, vector<1x8x32xf32>
    %197 = vector.shape_cast %196 : vector<1x8x32xf32> to vector<8x32xf32>
    %198 = arith.addf %194, %197 : vector<8x32xf32>
    %199 = arith.index_cast %190 : i32 to index
    %c0_108 = arith.constant 0 : index
    %c0_109 = arith.constant 0 : index
    %200 = vector.load %arg8[%199, %c0_108, %c0_109] : memref<8x8x32xf32, #tpu.memory_space<vmem>>, vector<1x8x32xf32>
    %201 = vector.shape_cast %200 : vector<1x8x32xf32> to vector<8x32xf32>
    %202 = arith.mulf %201, %173 : vector<8x32xf32>
    %203 = arith.index_cast %190 : i32 to index
    %c0_110 = arith.constant 0 : index
    %c0_111 = arith.constant 0 : index
    %204 = vector.load %arg9[%203, %c0_110, %c0_111] : memref<8x8x32xf32, #tpu.memory_space<vmem>>, vector<1x8x32xf32>
    %205 = vector.shape_cast %204 : vector<1x8x32xf32> to vector<8x32xf32>
    %206 = arith.addf %202, %205 : vector<8x32xf32>
    %207 = arith.index_cast %c4_i32 : i32 to index
    %c0_112 = arith.constant 0 : index
    %c0_113 = arith.constant 0 : index
    %208 = vector.load %arg7[%207, %c0_112, %c0_113] : memref<8x8x32xf32, #tpu.memory_space<vmem>>, vector<1x8x32xf32>
    %209 = vector.shape_cast %208 : vector<1x8x32xf32> to vector<8x32xf32>
    %210 = arith.mulf %209, %198 : vector<8x32xf32>
    %211 = arith.index_cast %c4_i32 : i32 to index
    %c0_114 = arith.constant 0 : index
    %c0_115 = arith.constant 0 : index
    %212 = vector.load %arg7[%211, %c0_114, %c0_115] : memref<8x8x32xf32, #tpu.memory_space<vmem>>, vector<1x8x32xf32>
    %213 = vector.shape_cast %212 : vector<1x8x32xf32> to vector<8x32xf32>
    %214 = vector.shape_cast %210 : vector<8x32xf32> to vector<1x8x32xf32>
    tpu.vector_store %arg7[%211, %c0_114, %c0_115], %214 {strides = array<i32>} : memref<8x8x32xf32, #tpu.memory_space<vmem>>, vector<1x8x32xf32>,
    %215 = arith.index_cast %190 : i32 to index
    %c0_116 = arith.constant 0 : index
    %c0_117 = arith.constant 0 : index
    %216 = vector.load %arg10[%215, %c0_116, %c0_117] : memref<8x8x32xf32, #tpu.memory_space<vmem>>, vector<1x8x32xf32>
    %217 = vector.shape_cast %216 : vector<1x8x32xf32> to vector<8x32xf32>
    %218 = arith.mulf %217, %206 : vector<8x32xf32>
    %219 = arith.index_cast %190 : i32 to index
    %c0_118 = arith.constant 0 : index
    %c0_119 = arith.constant 0 : index
    %220 = vector.load %arg10[%219, %c0_118, %c0_119] : memref<8x8x32xf32, #tpu.memory_space<vmem>>, vector<1x8x32xf32>
    %221 = vector.shape_cast %220 : vector<1x8x32xf32> to vector<8x32xf32>
    %222 = vector.shape_cast %218 : vector<8x32xf32> to vector<1x8x32xf32>
    tpu.vector_store %arg10[%219, %c0_118, %c0_119], %222 {strides = array<i32>} : memref<8x8x32xf32, #tpu.memory_space<vmem>>, vector<1x8x32xf32>,
    %c5_i32 = arith.constant 5 : i32
    %c7_i32_120 = arith.constant 7 : i32
    %223 = arith.subi %c7_i32_120, %c5_i32 : i32
    %224 = arith.index_cast %c5_i32 : i32 to index
    %c0_121 = arith.constant 0 : index
    %c0_122 = arith.constant 0 : index
    %225 = vector.load %arg5[%224, %c0_121, %c0_122] : memref<8x8x32xf32, #tpu.memory_space<vmem>>, vector<1x8x32xf32>
    %226 = vector.shape_cast %225 : vector<1x8x32xf32> to vector<8x32xf32>
    %227 = arith.mulf %226, %198 : vector<8x32xf32>
    %228 = arith.index_cast %c5_i32 : i32 to index
    %c0_123 = arith.constant 0 : index
    %c0_124 = arith.constant 0 : index
    %229 = vector.load %arg6[%228, %c0_123, %c0_124] : memref<8x8x32xf32, #tpu.memory_space<vmem>>, vector<1x8x32xf32>
    %230 = vector.shape_cast %229 : vector<1x8x32xf32> to vector<8x32xf32>
    %231 = arith.addf %227, %230 : vector<8x32xf32>
    %232 = arith.index_cast %223 : i32 to index
    %c0_125 = arith.constant 0 : index
    %c0_126 = arith.constant 0 : index
    %233 = vector.load %arg8[%232, %c0_125, %c0_126] : memref<8x8x32xf32, #tpu.memory_space<vmem>>, vector<1x8x32xf32>
    %234 = vector.shape_cast %233 : vector<1x8x32xf32> to vector<8x32xf32>
    %235 = arith.mulf %234, %206 : vector<8x32xf32>
    %236 = arith.index_cast %223 : i32 to index
    %c0_127 = arith.constant 0 : index
    %c0_128 = arith.constant 0 : index
    %237 = vector.load %arg9[%236, %c0_127, %c0_128] : memref<8x8x32xf32, #tpu.memory_space<vmem>>, vector<1x8x32xf32>
    %238 = vector.shape_cast %237 : vector<1x8x32xf32> to vector<8x32xf32>
    %239 = arith.addf %235, %238 : vector<8x32xf32>
    %240 = arith.index_cast %c5_i32 : i32 to index
    %c0_129 = arith.constant 0 : index
    %c0_130 = arith.constant 0 : index
    %241 = vector.load %arg7[%240, %c0_129, %c0_130] : memref<8x8x32xf32, #tpu.memory_space<vmem>>, vector<1x8x32xf32>
    %242 = vector.shape_cast %241 : vector<1x8x32xf32> to vector<8x32xf32>
    %243 = arith.mulf %242, %231 : vector<8x32xf32>
    %244 = arith.index_cast %c5_i32 : i32 to index
    %c0_131 = arith.constant 0 : index
    %c0_132 = arith.constant 0 : index
    %245 = vector.load %arg7[%244, %c0_131, %c0_132] : memref<8x8x32xf32, #tpu.memory_space<vmem>>, vector<1x8x32xf32>
    %246 = vector.shape_cast %245 : vector<1x8x32xf32> to vector<8x32xf32>
    %247 = vector.shape_cast %243 : vector<8x32xf32> to vector<1x8x32xf32>
    tpu.vector_store %arg7[%244, %c0_131, %c0_132], %247 {strides = array<i32>} : memref<8x8x32xf32, #tpu.memory_space<vmem>>, vector<1x8x32xf32>,
    %248 = arith.index_cast %223 : i32 to index
    %c0_133 = arith.constant 0 : index
    %c0_134 = arith.constant 0 : index
    %249 = vector.load %arg10[%248, %c0_133, %c0_134] : memref<8x8x32xf32, #tpu.memory_space<vmem>>, vector<1x8x32xf32>
    %250 = vector.shape_cast %249 : vector<1x8x32xf32> to vector<8x32xf32>
    %251 = arith.mulf %250, %239 : vector<8x32xf32>
    %252 = arith.index_cast %223 : i32 to index
    %c0_135 = arith.constant 0 : index
    %c0_136 = arith.constant 0 : index
    %253 = vector.load %arg10[%252, %c0_135, %c0_136] : memref<8x8x32xf32, #tpu.memory_space<vmem>>, vector<1x8x32xf32>
    %254 = vector.shape_cast %253 : vector<1x8x32xf32> to vector<8x32xf32>
    %255 = vector.shape_cast %251 : vector<8x32xf32> to vector<1x8x32xf32>
    tpu.vector_store %arg10[%252, %c0_135, %c0_136], %255 {strides = array<i32>} : memref<8x8x32xf32, #tpu.memory_space<vmem>>, vector<1x8x32xf32>,
    %c6_i32 = arith.constant 6 : i32
    %c7_i32_137 = arith.constant 7 : i32
    %256 = arith.subi %c7_i32_137, %c6_i32 : i32
    %257 = arith.index_cast %c6_i32 : i32 to index
    %c0_138 = arith.constant 0 : index
    %c0_139 = arith.constant 0 : index
    %258 = vector.load %arg5[%257, %c0_138, %c0_139] : memref<8x8x32xf32, #tpu.memory_space<vmem>>, vector<1x8x32xf32>
    %259 = vector.shape_cast %258 : vector<1x8x32xf32> to vector<8x32xf32>
    %260 = arith.mulf %259, %231 : vector<8x32xf32>
    %261 = arith.index_cast %c6_i32 : i32 to index
    %c0_140 = arith.constant 0 : index
    %c0_141 = arith.constant 0 : index
    %262 = vector.load %arg6[%261, %c0_140, %c0_141] : memref<8x8x32xf32, #tpu.memory_space<vmem>>, vector<1x8x32xf32>
    %263 = vector.shape_cast %262 : vector<1x8x32xf32> to vector<8x32xf32>
    %264 = arith.addf %260, %263 : vector<8x32xf32>
    %265 = arith.index_cast %256 : i32 to index
    %c0_142 = arith.constant 0 : index
    %c0_143 = arith.constant 0 : index
    %266 = vector.load %arg8[%265, %c0_142, %c0_143] : memref<8x8x32xf32, #tpu.memory_space<vmem>>, vector<1x8x32xf32>
    %267 = vector.shape_cast %266 : vector<1x8x32xf32> to vector<8x32xf32>
    %268 = arith.mulf %267, %239 : vector<8x32xf32>
    %269 = arith.index_cast %256 : i32 to index
    %c0_144 = arith.constant 0 : index
    %c0_145 = arith.constant 0 : index
    %270 = vector.load %arg9[%269, %c0_144, %c0_145] : memref<8x8x32xf32, #tpu.memory_space<vmem>>, vector<1x8x32xf32>
    %271 = vector.shape_cast %270 : vector<1x8x32xf32> to vector<8x32xf32>
    %272 = arith.addf %268, %271 : vector<8x32xf32>
    %273 = arith.index_cast %c6_i32 : i32 to index
    %c0_146 = arith.constant 0 : index
    %c0_147 = arith.constant 0 : index
    %274 = vector.load %arg7[%273, %c0_146, %c0_147] : memref<8x8x32xf32, #tpu.memory_space<vmem>>, vector<1x8x32xf32>
    %275 = vector.shape_cast %274 : vector<1x8x32xf32> to vector<8x32xf32>
    %276 = arith.mulf %275, %264 : vector<8x32xf32>
    %277 = arith.index_cast %c6_i32 : i32 to index
    %c0_148 = arith.constant 0 : index
    %c0_149 = arith.constant 0 : index
    %278 = vector.load %arg7[%277, %c0_148, %c0_149] : memref<8x8x32xf32, #tpu.memory_space<vmem>>, vector<1x8x32xf32>
    %279 = vector.shape_cast %278 : vector<1x8x32xf32> to vector<8x32xf32>
    %280 = vector.shape_cast %276 : vector<8x32xf32> to vector<1x8x32xf32>
    tpu.vector_store %arg7[%277, %c0_148, %c0_149], %280 {strides = array<i32>} : memref<8x8x32xf32, #tpu.memory_space<vmem>>, vector<1x8x32xf32>,
    %281 = arith.index_cast %256 : i32 to index
    %c0_150 = arith.constant 0 : index
    %c0_151 = arith.constant 0 : index
    %282 = vector.load %arg10[%281, %c0_150, %c0_151] : memref<8x8x32xf32, #tpu.memory_space<vmem>>, vector<1x8x32xf32>
    %283 = vector.shape_cast %282 : vector<1x8x32xf32> to vector<8x32xf32>
    %284 = arith.mulf %283, %272 : vector<8x32xf32>
    %285 = arith.index_cast %256 : i32 to index
    %c0_152 = arith.constant 0 : index
    %c0_153 = arith.constant 0 : index
    %286 = vector.load %arg10[%285, %c0_152, %c0_153] : memref<8x8x32xf32, #tpu.memory_space<vmem>>, vector<1x8x32xf32>
    %287 = vector.shape_cast %286 : vector<1x8x32xf32> to vector<8x32xf32>
    %288 = vector.shape_cast %284 : vector<8x32xf32> to vector<1x8x32xf32>
    tpu.vector_store %arg10[%285, %c0_152, %c0_153], %288 {strides = array<i32>} : memref<8x8x32xf32, #tpu.memory_space<vmem>>, vector<1x8x32xf32>,
    %c7_i32_154 = arith.constant 7 : i32
    %c7_i32_155 = arith.constant 7 : i32
    %289 = arith.subi %c7_i32_155, %c7_i32_154 : i32
    %290 = arith.index_cast %c7_i32_154 : i32 to index
    %c0_156 = arith.constant 0 : index
    %c0_157 = arith.constant 0 : index
    %291 = vector.load %arg5[%290, %c0_156, %c0_157] : memref<8x8x32xf32, #tpu.memory_space<vmem>>, vector<1x8x32xf32>
    %292 = vector.shape_cast %291 : vector<1x8x32xf32> to vector<8x32xf32>
    %293 = arith.mulf %292, %264 : vector<8x32xf32>
    %294 = arith.index_cast %c7_i32_154 : i32 to index
    %c0_158 = arith.constant 0 : index
    %c0_159 = arith.constant 0 : index
    %295 = vector.load %arg6[%294, %c0_158, %c0_159] : memref<8x8x32xf32, #tpu.memory_space<vmem>>, vector<1x8x32xf32>
    %296 = vector.shape_cast %295 : vector<1x8x32xf32> to vector<8x32xf32>
    %297 = arith.addf %293, %296 : vector<8x32xf32>
    %298 = arith.index_cast %289 : i32 to index
    %c0_160 = arith.constant 0 : index
    %c0_161 = arith.constant 0 : index
    %299 = vector.load %arg8[%298, %c0_160, %c0_161] : memref<8x8x32xf32, #tpu.memory_space<vmem>>, vector<1x8x32xf32>
    %300 = vector.shape_cast %299 : vector<1x8x32xf32> to vector<8x32xf32>
    %301 = arith.mulf %300, %272 : vector<8x32xf32>
    %302 = arith.index_cast %289 : i32 to index
    %c0_162 = arith.constant 0 : index
    %c0_163 = arith.constant 0 : index
    %303 = vector.load %arg9[%302, %c0_162, %c0_163] : memref<8x8x32xf32, #tpu.memory_space<vmem>>, vector<1x8x32xf32>
    %304 = vector.shape_cast %303 : vector<1x8x32xf32> to vector<8x32xf32>
    %305 = arith.addf %301, %304 : vector<8x32xf32>
    %306 = arith.index_cast %c7_i32_154 : i32 to index
    %c0_164 = arith.constant 0 : index
    %c0_165 = arith.constant 0 : index
    %307 = vector.load %arg7[%306, %c0_164, %c0_165] : memref<8x8x32xf32, #tpu.memory_space<vmem>>, vector<1x8x32xf32>
    %308 = vector.shape_cast %307 : vector<1x8x32xf32> to vector<8x32xf32>
    %309 = arith.mulf %308, %297 : vector<8x32xf32>
    %310 = arith.index_cast %c7_i32_154 : i32 to index
    %c0_166 = arith.constant 0 : index
    %c0_167 = arith.constant 0 : index
    %311 = vector.load %arg7[%310, %c0_166, %c0_167] : memref<8x8x32xf32, #tpu.memory_space<vmem>>, vector<1x8x32xf32>
    %312 = vector.shape_cast %311 : vector<1x8x32xf32> to vector<8x32xf32>
    %313 = vector.shape_cast %309 : vector<8x32xf32> to vector<1x8x32xf32>
    tpu.vector_store %arg7[%310, %c0_166, %c0_167], %313 {strides = array<i32>} : memref<8x8x32xf32, #tpu.memory_space<vmem>>, vector<1x8x32xf32>,
    %314 = arith.index_cast %289 : i32 to index
    %c0_168 = arith.constant 0 : index
    %c0_169 = arith.constant 0 : index
    %315 = vector.load %arg10[%314, %c0_168, %c0_169] : memref<8x8x32xf32, #tpu.memory_space<vmem>>, vector<1x8x32xf32>
    %316 = vector.shape_cast %315 : vector<1x8x32xf32> to vector<8x32xf32>
    %317 = arith.mulf %316, %305 : vector<8x32xf32>
    %318 = arith.index_cast %289 : i32 to index
    %c0_170 = arith.constant 0 : index
    %c0_171 = arith.constant 0 : index
    %319 = vector.load %arg10[%318, %c0_170, %c0_171] : memref<8x8x32xf32, #tpu.memory_space<vmem>>, vector<1x8x32xf32>
    %320 = vector.shape_cast %319 : vector<1x8x32xf32> to vector<8x32xf32>
    %321 = vector.shape_cast %317 : vector<8x32xf32> to vector<1x8x32xf32>
    tpu.vector_store %arg10[%318, %c0_170, %c0_171], %321 {strides = array<i32>} : memref<8x8x32xf32, #tpu.memory_space<vmem>>, vector<1x8x32xf32>,
    %c8_i32 = arith.constant 8 : i32
    %c0_172 = arith.constant 0 : index
    %c0_173 = arith.constant 0 : index
    %c0_174 = arith.constant 0 : index
    %322 = vector.load %arg7[%c0_172, %c0_173, %c0_174] : memref<8x8x32xf32, #tpu.memory_space<vmem>>, vector<8x8x32xf32>
    %323 = tpu.transpose %322, [1, 0, 2] : vector<8x8x32xf32> -> vector<8x8x32xf32>
    %c0_175 = arith.constant 0 : index
    %c0_176 = arith.constant 0 : index
    %c0_177 = arith.constant 0 : index
    %324 = vector.load %arg4[%c0_175, %c0_176, %c0_177] : memref<8x8x64xf32, #tpu.memory_space<vmem>>, vector<8x8x32xf32>
    tpu.vector_store %arg4[%c0_175, %c0_176, %c0_177], %323 {strides = array<i32>} : memref<8x8x64xf32, #tpu.memory_space<vmem>>, vector<8x8x32xf32>,
    %c0_178 = arith.constant 0 : index
    %c0_179 = arith.constant 0 : index
    %c0_180 = arith.constant 0 : index
    %325 = vector.load %arg10[%c0_178, %c0_179, %c0_180] : memref<8x8x32xf32, #tpu.memory_space<vmem>>, vector<8x8x32xf32>
    %326 = tpu.transpose %325, [1, 0, 2] : vector<8x8x32xf32> -> vector<8x8x32xf32>
    %c0_181 = arith.constant 0 : index
    %c0_182 = arith.constant 0 : index
    %c32 = arith.constant 32 : index
    %327 = vector.load %arg4[%c0_181, %c0_182, %c32] : memref<8x8x64xf32, #tpu.memory_space<vmem>>, vector<8x8x32xf32>
    tpu.vector_store %arg4[%c0_181, %c0_182, %c32], %326 {strides = array<i32>} : memref<8x8x64xf32, #tpu.memory_space<vmem>>, vector<8x8x32xf32>,
    return
  }
  func.func @transform_0(%arg0: i32) -> (i32, i32, i32) {
    %c0_i32 = arith.constant 0 : i32
    %c0_i32_0 = arith.constant 0 : i32
    %c0_i32_1 = arith.constant 0 : i32
    return %arg0, %c0_i32, %c0_i32_0 : i32, i32, i32
  }
  func.func @transform_1(%arg0: i32) -> (i32, i32, i32) {
    %c0_i32 = arith.constant 0 : i32
    %c0_i32_0 = arith.constant 0 : i32
    %c0_i32_1 = arith.constant 0 : i32
    %c0_i32_2 = arith.constant 0 : i32
    return %c0_i32, %c0_i32_0, %c0_i32_1 : i32, i32, i32
  }
  func.func @transform_2(%arg0: i32) -> (i32, i32) {
    %c0_i32 = arith.constant 0 : i32
    %c0_i32_0 = arith.constant 0 : i32
    %c0_i32_1 = arith.constant 0 : i32
    return %c0_i32, %c0_i32_0 : i32, i32
  }
  func.func @transform_3(%arg0: i32) -> (i32, i32, i32) {
    %c0_i32 = arith.constant 0 : i32
    %c0_i32_0 = arith.constant 0 : i32
    %c0_i32_1 = arith.constant 0 : i32
    return %arg0, %c0_i32, %c0_i32_0 : i32, i32, i32
  }
}

</mosaic_0001>

<bundles_post_ra>
// kernel: tpu_custom_call.1
= control target key start
LH: loop header
LB: loop body
LE: loop exit
PB: predicated region body
PF: predicated region fallthrough
CT: control target
= control target key end

     0   :  { %vm24_vm0 = vcmask 1047556   ;;  %v2318_v11 = vmov 1983009808   ;;  %s3667_s0 = inlined_call_operand.vmem [shape: f32[8,8,4], index: 0, kind: input, shape index: {}]   ;;  %s3668_s1 = inlined_call_operand.vmem [shape: f32[2,4,768], index: 1, kind: input, shape index: {}]   ;;  %s3669_s2 = inlined_call_operand.vmem [shape: f32[1,768], index: 2, kind: input, shape index: {}]   ;;  %s3670_s3 = inlined_call_operand.hbm [shape: f32[8,8,64], index: 3, kind: output, shape index: {}]  }
   0x1   :  { %v136_v0 = vld [vmem:[%s3668_s1] sm:$0xff]  ;;  %v137_v1 = vld [vmem:[%s3668_s1 + $0x8] sm:$0xff]  ;;  %v2363_v4 = vld [vmem:[%s3667_s0 + $0x10] sm:$0xff]  ;;  %v29_v12 = vunpack.c.l.s4 %v2318_v11 }
   0x2   :  { %142 = vst [vmem:[#allocation1] ss:$2 sm:$0xff] %v136_v0  ;;  %v2353_v2 = vld [vmem:[%s3667_s0] sm:$0xff]  ;;  %v2358_v3 = vld [vmem:[%s3667_s0 + $0x8] sm:$0xff]  ;;  %v2368_v5 = vld [vmem:[%s3667_s0 + $0x18] sm:$0xff]  ;;  %v23_v9 = vrot.slane %v2363_v4, 4 }
   0x3   :  { %144 = vst [vmem:[#allocation1 + $0x10] ss:$2 sm:$0xff] %v137_v1  ;;  %v2373_v6 = vld [vmem:[%s3667_s0 + $0x20] sm:$0xff]  ;;  %v2378_v7 = vld [vmem:[%s3667_s0 + $0x30] sm:$0xff]  ;;  %v2383_v8 = vld [vmem:[%s3667_s0 + $0x38] sm:$0xff]  ;;  %v36_v13 = vrot.slane %v2368_v5, 4 }
   0x4   :  { %v2389_v10 = vld [vmem:[%s3667_s0 + $0x28] sm:$0xff]  ;;  %v48_v14 = vrot.slane %v2378_v7, 4  ;;  %v138_v15 = vld [vmem:[%s3668_s1 + $0x10] sm:$0xff] }
   0x5   :  { %8 = vsyncpa [#allocation9], 0  ;;  %vm178_vm1 = vcmask 1043456   ;;  %v25_v16 = vsel %vm24_vm0, %v23_v9, %v2353_v2  ;;  %v60_v17 = vrot.slane %v2383_v8, 4  ;;  %146 = vst [vmem:[#allocation1 + $0x20] ss:$2 sm:$0xff] %v138_v15  ;;  %v2402_v19 = vunpack.c.0.s8 %v29_v12 }
   0x6   :  { %v2037_v18 = vld [vmem:[%s3668_s1 + $0x18] sm:$0xff]  ;;  %v37_v20 = vsel %vm24_vm0, %v36_v13, %v2358_v3  ;;  %v49_v21 = vsel %vm24_vm0, %v48_v14, %v2373_v6  ;;  %v2038_v22 = vld [vmem:[%s3668_s1 + $0x20] sm:$0xff]  ;;  %v2319_v24 = vmov 1934713408   ;;  %vm153_vm2 = vcmask 31744   ;;  %v2039_v13 = vld [vmem:[%s3668_s1 + $0x28] sm:$0xff] }
   0x7   :  { %3675 = vst [vmem:[#allocation11_spill] sm:$0xff] %v2402_v19  ;;  %v61_v23 = vsel %vm24_vm0, %v60_v17, %v2389_v10  ;;  %v77_v25 = vunpack.c.l.s4 %v2319_v24  ;;  %v31_v28 = vperm.slane %v25_v16, %v2402_v19  ;;  %v43_v29 = vperm.slane %v37_v20, %v2402_v19  ;;  %s2321_s13 = smov [#allocation8]   ;;  %s1971_s17 = sshll.u32 %s3670_s3, 4  ;;  %s1972_s17 = int_to_ptr.hbm [resolvable:$true] %s1971_s17 }
   0x8   :  { %v55_v30 = vperm.slane %v49_v21, %v2402_v19  ;;  %v67_v31 = vperm.slane %v61_v23, %v2402_v19  ;;  %v62_v49 = vrot.slane %v2389_v10, 4  ;;  %v38_v53 = vrot.slane %v2358_v3, 4  ;;  %s1969_s14 = sshll.u32 %s2321_s13, 4  ;;  %s2322_s18 = smov 128   ;;  %s1970_s14 = int_to_ptr.vmem [resolvable:$true] %s1969_s14 }
   0x9   :  { %v147_v26 = vld.sshfl [vmem:[#allocation1] sm:$0xff pattern:$0x75316420]  ;;  %v148_v27 = vld.sshfl [vmem:[#allocation1 + $0x8] sm:$0xff pattern:$0x75316420]  ;;  %v2419_v33 = vunpack.c.0.s8 %v77_v25 }
   0xa   :  { %1983 = vmatpush.msk.msra.mxu0 %vm178_vm1, %v147_v26  ;;  %1992 = vmatpush.msk.msra.mxu1 %vm178_vm1, %v148_v27  ;;  %438 = vst [vmem:[#allocation1] ss:$2 sm:$0xff] %v2037_v18  ;;  %v149_v32 = vld.sshfl [vmem:[#allocation1 + $0x10] sm:$0xff pattern:$0x75316420]  ;;  %v72_v35 = vrot.slane %v43_v29, 4  ;;  %v63_v55 = vsel %vm24_vm0, %v2383_v8, %v62_v49  ;;  %v39_v60 = vsel %vm24_vm0, %v2368_v5, %v38_v53 }
   0xb   :  { %3676 = vst [vmem:[#allocation12_spill] sm:$0xff] %v2419_v33  ;;  %2001 = vmatpush.msk.msra.mxu2 %vm178_vm1, %v149_v32  ;;  %v150_v34 = vld.sshfl [vmem:[#allocation1 + $0x18] sm:$0xff pattern:$0x75316420]  ;;  %v96_v36 = vrot.slane %v67_v31, 4  ;;  %v98_v43 = vrot.slane %v55_v30, 4  ;;  %v71_v58 = vperm.slane %v63_v55, %v2402_v19  ;;  %v47_v63 = vperm.slane %v39_v60, %v2402_v19 }
   0xc   :  { %2010 = vmatpush.msk.msra.mxu3 %vm178_vm1, %v150_v34  ;;  %440 = vst [vmem:[#allocation1 + $0x10] ss:$2 sm:$0xff] %v2038_v22  ;;  %v73_v37 = vsel %vm24_vm0, %v72_v35, %v31_v28  ;;  %v152_v39 = vld.sshfl [vmem:[#allocation1 + $0x28] sm:$0xff pattern:$0x75316420]  ;;  %v74_v47 = vrot.slane %v31_v28, 4 }
   0xd   :  { %v97_v38 = vsel %vm24_vm0, %v96_v36, %v55_v30  ;;  %v79_v40 = vperm.slane %v73_v37, %v2419_v33  ;;  %2028 = vmatpush.msk.msrb.mxu1 %vm178_vm1, %v152_v39  ;;  %v99_v48 = vsel %vm24_vm0, %v67_v31, %v98_v43  ;;  %v50_v54 = vrot.slane %v2373_v6, 4  ;;  %v151_v12 = vld.sshfl [vmem:[#allocation1 + $0x20] sm:$0xff pattern:$0x75316420]  ;;  %s2323_s19 = smov 8  }
   0xe   :  { %v103_v41 = vperm.slane %v97_v38, %v2419_v33  ;;  %v107_v51 = vperm.slane %v99_v48, %v2419_v33  ;;  %v75_v52 = vsel %vm24_vm0, %v43_v29, %v74_v47  ;;  %v26_v59 = vrot.slane %v2353_v2, 4  ;;  %2019 = vmatpush.msk.msrb.mxu0 %vm178_vm1, %v151_v12  ;;  %442 = vst [vmem:[#allocation1 + $0x20] ss:$2 sm:$0xff] %v2039_v13 }
   0xf   :  { %v122_v46 = vrot.slane %v79_v40, 4  ;;  %v83_v56 = vperm.slane %v75_v52, %v2419_v33  ;;  %v51_v61 = vsel %vm24_vm0, %v2378_v7, %v50_v54  ;;  %v108_v1 = vrot.slane %v71_v58, 4 }
  0x10   :  { %v120_v42 = vrot.slane %v103_v41, 4  ;;  %v124_v57 = vrot.slane %v107_v51, 4  ;;  %v59_v0 = vperm.slane %v51_v61, %v2402_v19  ;;  %v27_v3 = vsel %vm24_vm0, %v2363_v4, %v26_v59 }
  0x11   :  { %v444_v44 = vld.sshfl [vmem:[#allocation1 + $0x8] sm:$0xff pattern:$0x75316420]  ;;  %v2443_v50 = vsel %vm24_vm0, %v103_v41, %v122_v46  ;;  %v126_v2 = vrot.slane %v83_v56, 4  ;;  %v35_v5 = vperm.slane %v27_v3, %v2402_v19  ;;  %v84_v6 = vrot.slane %v47_v63, 4 }
  0x12   :  { %v2429_v45 = vsel %vm24_vm0, %v120_v42, %v79_v40  ;;  %2049 = vmatpush.msk.msrb.mxu3 %vm178_vm1, %v444_v44  ;;  %v2467_v62 = vsel %vm24_vm0, %v124_v57, %v83_v56  ;;  %v109_v7 = vsel %vm24_vm0, %v108_v1, %v59_v0  ;;  %v443_v14 = vld.sshfl [vmem:[#allocation1] sm:$0xff pattern:$0x75316420]  ;;  %v110_v16 = vrot.slane %v59_v0, 4 }
  0x13   :  { %1984 = vmatmul.msk.f32.vlgmr.msra.gmra.mxu0 %vm153_vm2, %v2429_v45  ;;  %1993 = vmatmul.msk.f32.vlgmr.msra.gmra.mxu1 %vm153_vm2, %v2429_v45  ;;  %v2484_v4 = vsel %vm24_vm0, %v107_v51, %v126_v2  ;;  %v115_v8 = vperm.slane %v109_v7, %v2419_v33  ;;  %v85_v9 = vsel %vm24_vm0, %v84_v6, %v35_v5  ;;  %v446_v18 = vld.sshfl [vmem:[#allocation1 + $0x18] sm:$0xff pattern:$0x75316420]  ;;  %v86_v20 = vrot.slane %v35_v5, 4 }
  0x14   :  { %2002 = vmatmul.msk.f32.vlgmr.msra.gmra.mxu2 %vm153_vm2, %v2429_v45  ;;  %2011 = vmatmul.msk.f32.vlgmr.msra.gmra.mxu3 %vm153_vm2, %v2429_v45  ;;  %v91_v10 = vperm.slane %v85_v9, %v2419_v33  ;;  %v111_v21 = vsel %vm24_vm0, %v71_v58, %v110_v16  ;;  %v445_v31 = vld.sshfl [vmem:[#allocation1 + $0x10] sm:$0xff pattern:$0x75316420]  ;;  %vm1129_vm6 = vcmask 261120  }
  0x15   :  { %v128_v11 = vrot.slane %v115_v8, 4  ;;  %2040 = vmatpush.msk.msrb.mxu2 %vm178_vm1, %v443_v14  ;;  %2067 = vmatpush.msk.msra.mxu1 %vm178_vm1, %v446_v18  ;;  %v119_v23 = vperm.slane %v111_v21, %v2419_v33  ;;  %v87_v24 = vsel %vm24_vm0, %v47_v63, %v86_v20  ;;  %v448_v30 = vld.sshfl [vmem:[#allocation1 + $0x28] sm:$0xff pattern:$0x75316420]  ;;  %v755_v21 = vld [vmem:[%s3669_s2] sm:$0x3f] }
  0x16   :  { %v130_v17 = vrot.slane %v91_v10, 4  ;;  %v95_v25 = vperm.slane %v87_v24, %v2419_v33  ;;  %2085 = vmatpush.msk.msra.mxu3 %vm178_vm1, %v448_v30  ;;  %v447_v32 = vld.sshfl [vmem:[#allocation1 + $0x20] sm:$0xff pattern:$0x75316420]  ;;  %2058 = vmatpush.msk.msra.mxu0 %vm178_vm1, %v445_v31  ;;  %v757_v24 = vperm.slane %v755_v21, 0  ;;  %s2320_s2 = smov 32  }
  0x17   :  { %v2503_v15 = vsel %vm24_vm0, %v128_v11, %v91_v10  ;;  %v132_v26 = vrot.slane %v119_v23, 4  ;;  %2076 = vmatpush.msk.msra.mxu2 %vm178_vm1, %v447_v32 }
  0x18   :  { %v2516_v22 = vsel %vm24_vm0, %v115_v8, %v130_v17  ;;  %v134_v28 = vrot.slane %v95_v25, 4 }
  0x19   :  { %v2530_v27 = vsel %vm24_vm0, %v132_v26, %v95_v25  ;;  %v758_v25 = vperm.slane %v755_v21, 1 }
  0x1a   :  { %v2541_v29 = vsel %vm24_vm0, %v119_v23, %v134_v28 }
  0x1b   :  { %1985 = vmatmul.msk.f32.gmra.mxu0 %vm153_vm2, %v2443_v50  ;;  %1994 = vmatmul.msk.f32.gmra.mxu1 %vm153_vm2, %v2443_v50 }
  0x1c   :  { %2003 = vmatmul.msk.f32.gmra.mxu2 %vm153_vm2, %v2443_v50  ;;  %2012 = vmatmul.msk.f32.gmra.mxu3 %vm153_vm2, %v2443_v50 }
  0x23   :  { %1986 = vmatmul.msk.f32.gmra.mxu0 %vm153_vm2, %v2467_v62  ;;  %1995 = vmatmul.msk.f32.gmra.mxu1 %vm153_vm2, %v2467_v62 }
  0x24   :  { %2004 = vmatmul.msk.f32.gmra.mxu2 %vm153_vm2, %v2467_v62  ;;  %2013 = vmatmul.msk.f32.gmra.mxu3 %vm153_vm2, %v2467_v62 }
  0x2b   :  { %1987 = vmatmul.msk.f32.gmra.mxu0 %vm153_vm2, %v2484_v4  ;;  %1996 = vmatmul.msk.f32.gmra.mxu1 %vm153_vm2, %v2484_v4 }
  0x2c   :  { %2005 = vmatmul.msk.f32.gmra.mxu2 %vm153_vm2, %v2484_v4  ;;  %2014 = vmatmul.msk.f32.gmra.mxu3 %vm153_vm2, %v2484_v4 }
  0x33   :  { %1988 = vmatmul.msk.f32.gmra.mxu0 %vm153_vm2, %v2503_v15  ;;  %1997 = vmatmul.msk.f32.gmra.mxu1 %vm153_vm2, %v2503_v15 }
  0x34   :  { %2006 = vmatmul.msk.f32.gmra.mxu2 %vm153_vm2, %v2503_v15  ;;  %2015 = vmatmul.msk.f32.gmra.mxu3 %vm153_vm2, %v2503_v15 }
  0x3b   :  { %1989 = vmatmul.msk.f32.gmra.mxu0 %vm153_vm2, %v2516_v22  ;;  %1998 = vmatmul.msk.f32.gmra.mxu1 %vm153_vm2, %v2516_v22 }
  0x3c   :  { %2007 = vmatmul.msk.f32.gmra.mxu2 %vm153_vm2, %v2516_v22  ;;  %2016 = vmatmul.msk.f32.gmra.mxu3 %vm153_vm2, %v2516_v22 }
  0x43   :  { %1990 = vmatmul.msk.f32.gmra.mxu0 %vm153_vm2, %v2530_v27  ;;  %1999 = vmatmul.msk.f32.gmra.mxu1 %vm153_vm2, %v2530_v27 }
  0x44   :  { %2008 = vmatmul.msk.f32.gmra.mxu2 %vm153_vm2, %v2530_v27  ;;  %2017 = vmatmul.msk.f32.gmra.mxu3 %vm153_vm2, %v2530_v27 }
  0x4b   :  { %1991 = vmatmul.msk.f32.gmra.mxu0 %vm153_vm2, %v2541_v29  ;;  %2000 = vmatmul.msk.f32.gmra.mxu1 %vm153_vm2, %v2541_v29 }
  0x4c   :  { %2009 = vmatmul.msk.f32.gmra.mxu2 %vm153_vm2, %v2541_v29  ;;  %2018 = vmatmul.msk.f32.gmra.mxu3 %vm153_vm2, %v2541_v29 }
  0x53   :  { %2020 = vmatmul.msk.f32.vlgmr.msrb.gmra.mxu0 %vm153_vm2, %v2429_v45  ;;  %2029 = vmatmul.msk.f32.vlgmr.msrb.gmra.mxu1 %vm153_vm2, %v2429_v45 }
  0x54   :  { %2041 = vmatmul.msk.f32.vlgmr.msrb.gmra.mxu2 %vm153_vm2, %v2429_v45  ;;  %2050 = vmatmul.msk.f32.vlgmr.msrb.gmra.mxu3 %vm153_vm2, %v2429_v45 }
  0x5b   :  { %2021 = vmatmul.msk.f32.gmra.mxu0 %vm153_vm2, %v2443_v50  ;;  %2030 = vmatmul.msk.f32.gmra.mxu1 %vm153_vm2, %v2443_v50 }
  0x5c   :  { %2042 = vmatmul.msk.f32.gmra.mxu2 %vm153_vm2, %v2443_v50  ;;  %2051 = vmatmul.msk.f32.gmra.mxu3 %vm153_vm2, %v2443_v50 }
  0x63   :  { %2022 = vmatmul.msk.f32.gmra.mxu0 %vm153_vm2, %v2467_v62  ;;  %2031 = vmatmul.msk.f32.gmra.mxu1 %vm153_vm2, %v2467_v62 }
  0x64   :  { %2043 = vmatmul.msk.f32.gmra.mxu2 %vm153_vm2, %v2467_v62  ;;  %2052 = vmatmul.msk.f32.gmra.mxu3 %vm153_vm2, %v2467_v62 }
  0x6b   :  { %2023 = vmatmul.msk.f32.gmra.mxu0 %vm153_vm2, %v2484_v4  ;;  %2032 = vmatmul.msk.f32.gmra.mxu1 %vm153_vm2, %v2484_v4 }
  0x6c   :  { %2044 = vmatmul.msk.f32.gmra.mxu2 %vm153_vm2, %v2484_v4  ;;  %2053 = vmatmul.msk.f32.gmra.mxu3 %vm153_vm2, %v2484_v4 }
  0x73   :  { %2024 = vmatmul.msk.f32.gmra.mxu0 %vm153_vm2, %v2503_v15  ;;  %2033 = vmatmul.msk.f32.gmra.mxu1 %vm153_vm2, %v2503_v15 }
  0x74   :  { %2045 = vmatmul.msk.f32.gmra.mxu2 %vm153_vm2, %v2503_v15  ;;  %2054 = vmatmul.msk.f32.gmra.mxu3 %vm153_vm2, %v2503_v15 }
  0x7b   :  { %2025 = vmatmul.msk.f32.gmra.mxu0 %vm153_vm2, %v2516_v22  ;;  %2034 = vmatmul.msk.f32.gmra.mxu1 %vm153_vm2, %v2516_v22 }
  0x7c   :  { %2046 = vmatmul.msk.f32.gmra.mxu2 %vm153_vm2, %v2516_v22  ;;  %2055 = vmatmul.msk.f32.gmra.mxu3 %vm153_vm2, %v2516_v22 }
  0x83   :  { %2026 = vmatmul.msk.f32.gmra.mxu0 %vm153_vm2, %v2530_v27  ;;  %2035 = vmatmul.msk.f32.gmra.mxu1 %vm153_vm2, %v2530_v27 }
  0x84   :  { %2047 = vmatmul.msk.f32.gmra.mxu2 %vm153_vm2, %v2530_v27  ;;  %2056 = vmatmul.msk.f32.gmra.mxu3 %vm153_vm2, %v2530_v27 }
  0x8b   :  { %2027 = vmatmul.msk.f32.gmra.mxu0 %vm153_vm2, %v2541_v29  ;;  %2036 = vmatmul.msk.f32.gmra.mxu1 %vm153_vm2, %v2541_v29 }
  0x8c   :  { %2048 = vmatmul.msk.f32.gmra.mxu2 %vm153_vm2, %v2541_v29  ;;  %2057 = vmatmul.msk.f32.gmra.mxu3 %vm153_vm2, %v2541_v29 }
  0x90   :  { %v2618_v34 = vpop.f32.mrf.mxu0  ;;  %v2620_v35 = vpop.f32.mrf.mxu1 }
  0x93   :  { %2059 = vmatmul.msk.f32.vlgmr.msra.gmra.mxu0 %vm153_vm2, %v2429_v45  ;;  %2068 = vmatmul.msk.f32.vlgmr.msra.gmra.mxu1 %vm153_vm2, %v2429_v45 }
  0x94   :  { %2077 = vmatmul.msk.f32.vlgmr.msra.gmra.mxu2 %vm153_vm2, %v2429_v45  ;;  %2086 = vmatmul.msk.f32.vlgmr.msra.gmra.mxu3 %vm153_vm2, %v2429_v45 }
  0x97   :  { %v2630_v36 = vpop.f32.mrf.mxu2  ;;  %v2632_v37 = vpop.f32.mrf.mxu3 }
  0x98   :  { %v2634_v38 = vpop.f32.mrf.mxu0  ;;  %v2636_v39 = vpop.f32.mrf.mxu1 }
  0x9b   :  { %2060 = vmatmul.msk.f32.gmra.mxu0 %vm153_vm2, %v2443_v50  ;;  %2069 = vmatmul.msk.f32.gmra.mxu1 %vm153_vm2, %v2443_v50 }
  0x9c   :  { %2078 = vmatmul.msk.f32.gmra.mxu2 %vm153_vm2, %v2443_v50  ;;  %2087 = vmatmul.msk.f32.gmra.mxu3 %vm153_vm2, %v2443_v50 }
  0x9f   :  { %v2646_v40 = vpop.f32.mrf.mxu2  ;;  %v2648_v41 = vpop.f32.mrf.mxu3 }
  0xa0   :  { %v2650_v42 = vpop.f32.mrf.mxu0  ;;  %v2652_v43 = vpop.f32.mrf.mxu1 }
  0xa3   :  { %2061 = vmatmul.msk.f32.gmra.mxu0 %vm153_vm2, %v2467_v62  ;;  %2070 = vmatmul.msk.f32.gmra.mxu1 %vm153_vm2, %v2467_v62 }
  0xa4   :  { %2079 = vmatmul.msk.f32.gmra.mxu2 %vm153_vm2, %v2467_v62  ;;  %2088 = vmatmul.msk.f32.gmra.mxu3 %vm153_vm2, %v2467_v62 }
  0xa7   :  { %v2662_v44 = vpop.f32.mrf.mxu2  ;;  %v2664_v45 = vpop.f32.mrf.mxu3 }
  0xa8   :  { %v2666_v46 = vpop.f32.mrf.mxu0  ;;  %v2668_v47 = vpop.f32.mrf.mxu1 }
  0xab   :  { %2062 = vmatmul.msk.f32.gmra.mxu0 %vm153_vm2, %v2484_v4  ;;  %2071 = vmatmul.msk.f32.gmra.mxu1 %vm153_vm2, %v2484_v4 }
  0xac   :  { %2080 = vmatmul.msk.f32.gmra.mxu2 %vm153_vm2, %v2484_v4  ;;  %2089 = vmatmul.msk.f32.gmra.mxu3 %vm153_vm2, %v2484_v4 }
  0xaf   :  { %v2678_v48 = vpop.f32.mrf.mxu2  ;;  %v2680_v49 = vpop.f32.mrf.mxu3 }
  0xb0   :  { %v2682_v50 = vpop.f32.mrf.mxu0  ;;  %v2684_v51 = vpop.f32.mrf.mxu1 }
  0xb3   :  { %2063 = vmatmul.msk.f32.gmra.mxu0 %vm153_vm2, %v2503_v15  ;;  %2072 = vmatmul.msk.f32.gmra.mxu1 %vm153_vm2, %v2503_v15 }
  0xb4   :  { %2081 = vmatmul.msk.f32.gmra.mxu2 %vm153_vm2, %v2503_v15  ;;  %2090 = vmatmul.msk.f32.gmra.mxu3 %vm153_vm2, %v2503_v15 }
  0xb7   :  { %v2694_v52 = vpop.f32.mrf.mxu2  ;;  %v2696_v53 = vpop.f32.mrf.mxu3 }
  0xb8   :  { %v2698_v54 = vpop.f32.mrf.mxu0  ;;  %v2700_v55 = vpop.f32.mrf.mxu1 }
  0xbb   :  { %2064 = vmatmul.msk.f32.gmra.mxu0 %vm153_vm2, %v2516_v22  ;;  %2073 = vmatmul.msk.f32.gmra.mxu1 %vm153_vm2, %v2516_v22 }
  0xbc   :  { %2082 = vmatmul.msk.f32.gmra.mxu2 %vm153_vm2, %v2516_v22  ;;  %2091 = vmatmul.msk.f32.gmra.mxu3 %vm153_vm2, %v2516_v22 }
  0xbf   :  { %v2710_v56 = vpop.f32.mrf.mxu2  ;;  %v2712_v57 = vpop.f32.mrf.mxu3 }
  0xc0   :  { %3677 = vst [vmem:[#allocation13_spill] sm:$0xff] %v2710_v56  ;;  %v2714_v58 = vpop.f32.mrf.mxu0  ;;  %v2716_v59 = vpop.f32.mrf.mxu1 }
  0xc1   :  { %3678 = vst [vmem:[#allocation14_spill] sm:$0xff] %v2712_v57 }
  0xc3   :  { %2065 = vmatmul.msk.f32.gmra.mxu0 %vm153_vm2, %v2530_v27  ;;  %2074 = vmatmul.msk.f32.gmra.mxu1 %vm153_vm2, %v2530_v27 }
  0xc4   :  { %2083 = vmatmul.msk.f32.gmra.mxu2 %vm153_vm2, %v2530_v27  ;;  %2092 = vmatmul.msk.f32.gmra.mxu3 %vm153_vm2, %v2530_v27 }
  0xc7   :  { %v2726_v60 = vpop.f32.mrf.mxu2  ;;  %v2728_v61 = vpop.f32.mrf.mxu3 }
  0xc8   :  { %3679 = vst [vmem:[#allocation15_spill] sm:$0xff] %v2726_v60  ;;  %v229_v62 = vpop.f32.mrf.mxu0  ;;  %v269_v63 = vpop.f32.mrf.mxu1 }
  0xc9   :  { %3680 = vst [vmem:[#allocation16_spill] sm:$0xff] %v2728_v61 }
  0xcb   :  { %2066 = vmatmul.msk.f32.gmra.mxu0 %vm153_vm2, %v2541_v29  ;;  %2075 = vmatmul.msk.f32.gmra.mxu1 %vm153_vm2, %v2541_v29 }
  0xcc   :  { %2084 = vmatmul.msk.f32.gmra.mxu2 %vm153_vm2, %v2541_v29  ;;  %2093 = vmatmul.msk.f32.gmra.mxu3 %vm153_vm2, %v2541_v29 }
  0xcf   :  { %v309_v0 = vpop.f32.mrf.mxu2  ;;  %v349_v1 = vpop.f32.mrf.mxu3 }
  0xd0   :  { %v2738_v3 = vpop.f32.mrf.mxu0  ;;  %v2740_v2 = vpop.f32.mrf.mxu1 }
  0xd7   :  { %v478_v5 = vpop.f32.mrf.mxu2  ;;  %v519_v6 = vpop.f32.mrf.mxu3 }
  0xd8   :  { %v2742_v7 = vpop.f32.mrf.mxu0  ;;  %v2744_v4 = vpop.f32.mrf.mxu1 }
  0xdf   :  { %v481_v8 = vpop.f32.mrf.mxu2  ;;  %v522_v9 = vpop.f32.mrf.mxu3 }
  0xe0   :  { %v2746_v10 = vpop.f32.mrf.mxu0  ;;  %v2748_v11 = vpop.f32.mrf.mxu1 }
  0xe7   :  { %v484_v12 = vpop.f32.mrf.mxu2  ;;  %v525_v13 = vpop.f32.mrf.mxu3 }
  0xe8   :  { %v2750_v14 = vpop.f32.mrf.mxu0  ;;  %v2752_v15 = vpop.f32.mrf.mxu1 }
  0xef   :  { %v487_v16 = vpop.f32.mrf.mxu2  ;;  %v528_v17 = vpop.f32.mrf.mxu3 }
  0xf0   :  { %v2754_v18 = vpop.f32.mrf.mxu0  ;;  %v2756_v20 = vpop.f32.mrf.mxu1 }
  0xf7   :  { %v490_v22 = vpop.f32.mrf.mxu2  ;;  %v531_v23 = vpop.f32.mrf.mxu3 }
  0xf8   :  { %v731_v26 = vadd.f32 %v490_v22, %v2666_v46  ;;  %v732_v27 = vadd.f32 %v531_v23, %v2668_v47  ;;  %v2763_v28 = vpop.f32.mrf.mxu0  ;;  %v2765_v29 = vpop.f32.mrf.mxu1 }
  0xf9   :  { %3681 = vst [vmem:[#allocation17_spill] sm:$0xff] %v2763_v28 }
  0xfa   :  { %3682 = vst [vmem:[#allocation18_spill] sm:$0xff] %v2765_v29  ;;  %v2767_v30 = vadd.f32 %v757_v24, %v731_v26  ;;  %v2769_v31 = vadd.f32 %v758_v25, %v732_v27 }
  0xff   :  { %v493_v32 = vpop.f32.mrf.mxu2  ;;  %v534_v62 = vpop.f32.mrf.mxu3 }
 0x100   :  { %v737_v63 = vadd.f32 %v493_v32, %v2682_v50  ;;  %v738_v0 = vadd.f32 %v534_v62, %v2684_v51  ;;  %v2773_v1 = vpop.f32.mrf.mxu0  ;;  %v2775_v33 = vpop.f32.mrf.mxu1  ;;  %v713_v51 = vadd.f32 %v481_v8, %v2618_v34  ;;  %v714_v32 = vadd.f32 %v522_v9, %v2620_v35 }
 0x101   :  { %3683 = vst [vmem:[#allocation19_spill] sm:$0xff] %v2773_v1  ;;  %v2789_v62 = vperm.slane %v755_v21, 2  ;;  %v720_v35 = vadd.f32 %v525_v13, %v2636_v39 }
 0x102   :  { %3684 = vst [vmem:[#allocation20_spill] sm:$0xff] %v2775_v33  ;;  %v2777_v46 = vadd.f32 %v757_v24, %v737_v63  ;;  %v2779_v47 = vadd.f32 %v758_v25, %v738_v0  ;;  %v2791_v63 = vperm.slane %v755_v21, 3  ;;  %v769_v0 = vadd.f32 %v757_v24, %v478_v5 }
 0x103   :  { %v770_v33 = vadd.f32 %v758_v25, %v519_v6  ;;  %v776_v34 = vadd.f32 %v758_v25, %v714_v32  ;;  %v725_v5 = vadd.f32 %v487_v16, %v2650_v42  ;;  %v782_v39 = vadd.f32 %v758_v25, %v720_v35 }
 0x104   :  { %3685 = vst [vmem:[#allocation21_spill] sm:$0xff] %v2779_v47  ;;  %2132 = vtanh.f32 %v769_v0 }
 0x105   :  { %2134 = vtanh.f32 %v770_v33  ;;  %v787_v13 = vadd.f32 %v757_v24, %v725_v5 }
 0x107   :  { %v496_v22 = vpop.f32.mrf.mxu2  ;;  %v537_v23 = vpop.f32.mrf.mxu3 }
 0x108   :  { %v743_v26 = vadd.f32 %v496_v22, %v2698_v54  ;;  %v744_v27 = vadd.f32 %v537_v23, %v2700_v55  ;;  %v389_v19 = vpop.f32.mrf.mxu0  ;;  %v429_v61 = vpop.f32.mrf.mxu1  ;;  %v775_v22 = vadd.f32 %v757_v24, %v713_v51  ;;  %v2807_v51 = vperm.slane %v755_v21, 4 }
 0x109   :  { %v719_v19 = vadd.f32 %v484_v12, %v2634_v38  ;;  %v726_v38 = vadd.f32 %v528_v17, %v2652_v43 }
 0x10a   :  { %v2783_v60 = vadd.f32 %v757_v24, %v743_v26  ;;  %v2785_v50 = vadd.f32 %v758_v25, %v744_v27  ;;  %2136 = vtanh.f32 %v775_v22  ;;  %v2809_v0 = vpop.eup %2132 }
 0x10b   :  { %v781_v12 = vadd.f32 %v757_v24, %v719_v19  ;;  %2138 = vtanh.f32 %v776_v34  ;;  %v788_v42 = vadd.f32 %v758_v25, %v726_v38  ;;  %v2813_v22 = vpop.eup %2134 }
 0x10c   :  { %3686 = vst [vmem:[#allocation22_spill] sm:$0xff] %v2783_v60 }
 0x10d   :  { %3687 = vst [vmem:[#allocation23_spill] sm:$0xff] %v2785_v50 }
 0x10f   :  { %v499_v1 = vpop.f32.mrf.mxu2  ;;  %v540_v54 = vpop.f32.mrf.mxu3 }
 0x110   :  { %v749_v55 = vadd.f32 %v499_v1, %v2714_v58  ;;  %v750_v61 = vadd.f32 %v540_v54, %v2716_v59  ;;  %v560_v23 = vpop.f32.mrf.mxu0  ;;  %v601_v26 = vpop.f32.mrf.mxu1  ;;  %v2805_v1 = vperm.slane %v755_v21, 5 }
 0x111   :  { %v771_v8 = vadd.f32 %v2789_v62, %v560_v23  ;;  %v772_v9 = vadd.f32 %v2791_v63, %v601_v26 }
 0x112   :  { %v2800_v6 = vadd.f32 %v757_v24, %v749_v55  ;;  %v2802_v27 = vadd.f32 %v758_v25, %v750_v61  ;;  %v2817_v25 = vpop.eup %2136 }
 0x113   :  { %v2094_v58 = vmul.f32 -1.442695, %v771_v8  ;;  %v2110_v59 = vmul.f32 -1.442695, %v772_v9  ;;  %v2819_v61 = vpop.eup %2138 }
 0x114   :  { %3688 = vst [vmem:[#allocation24_spill] sm:$0xff] %v2800_v6 }
 0x115   :  { %3689 = vst [vmem:[#allocation25_spill] sm:$0xff] %v2802_v27  ;;  %2140 = vpow2.f32 %v2094_v58 }
 0x116   :  { %2142 = vpow2.f32 %v2110_v59 }
 0x117   :  { %v642_v16 = vpop.f32.mrf.mxu2  ;;  %v683_v32 = vpop.f32.mrf.mxu3  ;;  %2144 = vtanh.f32 %v781_v12 }
 0x118   :  { %v773_v33 = vadd.f32 %v2807_v51, %v642_v16  ;;  %v774_v43 = vadd.f32 %v2805_v1, %v683_v32  ;;  %v563_v17 = vpop.f32.mrf.mxu0  ;;  %v604_v54 = vpop.f32.mrf.mxu1  ;;  %2146 = vtanh.f32 %v782_v39 }
 0x119   :  { %v715_v24 = vadd.f32 %v563_v17, %v2630_v36  ;;  %v716_v21 = vadd.f32 %v604_v54, %v2632_v37  ;;  %2148 = vtanh.f32 %v787_v13 }
 0x11a   :  { %v2102_v19 = vmul.f32 -1.442695, %v773_v33  ;;  %v2118_v55 = vmul.f32 -1.442695, %v774_v43  ;;  %2150 = vtanh.f32 %v788_v42 }
 0x11b   :  { %v777_v23 = vadd.f32 %v2789_v62, %v715_v24  ;;  %v778_v26 = vadd.f32 %v2791_v63, %v716_v21  ;;  %v2141_v34 = vpop.eup %2140 }
 0x11c   :  { %2152 = vpow2.f32 %v2102_v19  ;;  %v2143_v35 = vpop.eup %2142  ;;  %v2823_v8 = vadd.f32 1.0, %v2141_v34 }
 0x11d   :  { %2154 = vpow2.f32 %v2118_v55  ;;  %v2095_v36 = vmul.f32 -1.442695, %v777_v23  ;;  %v2825_v37 = vpop.eup %2144  ;;  %v2828_v9 = vadd.f32 1.0, %v2143_v35  ;;  %v2111_v5 = vmul.f32 -1.442695, %v778_v26 }
 0x11e   :  { %2156 = vtanh.f32 %v2767_v30  ;;  %v2830_v38 = vpop.eup %2146  ;;  %v866_v12 = vand.u32 2147483647, %v2823_v8  ;;  %v868_v39 = vand.u32 2147483648, %v2823_v8  ;;  %vm862_vm3 = vweird.f32 %v2823_v8 }
 0x11f   :  { %2158 = vrcp.f32 %v2823_v8  ;;  %v645_v58 = vpop.f32.mrf.mxu2  ;;  %v2833_v59 = vpop.eup %2148  ;;  %v1221_v13 = vand.u32 2147483648, %v2828_v9  ;;  %v1219_v54 = vand.u32 2147483647, %v2828_v9  ;;  %vm1215_vm5 = vweird.f32 %v2828_v9 }
 0x120   :  { %2160 = vrcp.f32 %v2828_v9  ;;  %v686_v42 = vpop.f32.mrf.mxu3  ;;  %v2839_v30 = vpop.eup %2150  ;;  %v717_v16 = vadd.f32 %v645_v58, %v2738_v3  ;;  %vm2849_vm4 = vcmp.eq.f32.partialorder %v866_v12, 8.507059e+37  ;;  %v869_v3 = vor.u32 1.1754944e-38, %v868_v39 }
 0x121   :  { %2162 = vpow2.f32 %v2095_v36  ;;  %v566_v33 = vpop.f32.mrf.mxu0  ;;  %v607_v43 = vpop.f32.mrf.mxu1  ;;  %v718_v21 = vadd.f32 %v686_v42, %v2740_v2  ;;  %v2853_v23 = vor.u32 1.1754944e-38, %v1221_v13  ;;  %vm2871_vm8 = vcmp.eq.f32.partialorder %v1219_v54, 8.507059e+37 }
 0x122   :  { %v2153_v32 = vpop.eup %2152  ;;  %2164 = vpow2.f32 %v2111_v5  ;;  %v779_v35 = vadd.f32 %v2807_v51, %v717_v16  ;;  %v2861_v2 = vadd.f32 %v566_v33, %v2646_v40  ;;  %v2864_v36 = vadd.f32 %v607_v43, %v2648_v41 }
 0x123   :  { %v2155_v17 = vpop.eup %2154  ;;  %v2844_v24 = vadd.f32 1.0, %v2153_v32  ;;  %v780_v41 = vadd.f32 %v2805_v1, %v718_v21 }
 0x124   :  { %v2847_v19 = vpop.eup %2156  ;;  %v2855_v26 = vadd.f32 1.0, %v2155_v17 }
 0x125   :  { %v2159_v34 = vpop.eup %2158  ;;  %2166 = vrcp.f32 %v2844_v24  ;;  %v1018_v12 = vand.u32 2147483647, %v2844_v24  ;;  %v1020_v39 = vand.u32 2147483648, %v2844_v24  ;;  %vm1014_vm9 = vweird.f32 %v2844_v24 }
 0x126   :  { %v2161_v5 = vpop.eup %2160  ;;  %v858_v58 = vmul.f32 %v2159_v34, %v2823_v8  ;;  %2168 = vrcp.f32 %v2855_v26  ;;  %vm863_vm7 = vweird.f32 %v2159_v34  ;;  %vm1367_vm10 = vweird.f32 %v2855_v26 }
 0x127   :  { %v2163_v13 = vpop.eup %2162  ;;  %v1211_v42 = vmul.f32 %v2161_v5, %v2828_v9  ;;  %v1371_v33 = vand.u32 2147483647, %v2855_v26  ;;  %vm1216_vm11 = vweird.f32 %v2161_v5  ;;  %v1373_v27 = vand.u32 2147483648, %v2855_v26  ;;  %vm2892_vm13 = vmor %vm862_vm3, %vm863_vm7 }
 0x128   :  { %v2165_v16 = vpop.eup %2164  ;;  %v859_v32 = vsub.f32 1.0, %v858_v58  ;;  %v2879_v43 = vadd.f32 1.0, %v2163_v13  ;;  %vm2884_vm12 = vcmp.eq.f32.partialorder %v1018_v12, 8.507059e+37  ;;  %v1021_v21 = vor.u32 1.1754944e-38, %v1020_v39  ;;  %vm1217_vm1 = vmor %vm1215_vm5, %vm1216_vm11 }
 0x129   :  { %v1212_v17 = vsub.f32 1.0, %v1211_v42  ;;  %v2882_v54 = vadd.f32 1.0, %v2165_v16  ;;  %v2103_v58 = vmul.f32 -1.442695, %v779_v35  ;;  %vm2896_vm14 = vcmp.eq.f32.partialorder %v1371_v33, 8.507059e+37 }
 0x12a   :  { %v860_v6 = vmul.f32 %v2159_v34, %v859_v32  ;;  %2170 = vrcp.f32 %v2879_v43  ;;  %v881_v12 = vand.u32 2147483647, %v2879_v43  ;;  %v2119_v32 = vmul.f32 -1.442695, %v780_v41 }
 0x12b   :  { %v2167_v60 = vpop.eup %2166  ;;  %v1213_v42 = vmul.f32 %v2161_v5, %v1212_v17  ;;  %v883_v28 = vand.u32 2147483648, %v2879_v43  ;;  %2172 = vrcp.f32 %v2882_v54  ;;  %v1374_v57 = vor.u32 1.1754944e-38, %v1373_v27 }
 0x12c   :  { %v2169_v39 = vpop.eup %2168  ;;  %v861_v29 = vadd.f32 %v2159_v34, %v860_v6  ;;  %v1010_v35 = vmul.f32 %v2167_v60, %v2844_v24  ;;  %vm877_vm15 = vweird.f32 %v2879_v43  ;;  %vm1015_vm2 = vweird.f32 %v2167_v60 }
 0x12d   :  { %v1214_v8 = vadd.f32 %v2161_v5, %v1213_v42  ;;  %v1363_v47 = vmul.f32 %v2169_v39, %v2855_v26  ;;  %vm1368_vm3 = vweird.f32 %v2169_v39  ;;  %vm2913_vm7 = vcmp.eq.f32.partialorder %v881_v12, 8.507059e+37 }
 0x12e   :  { %v865_v33 = vsel %vm2892_vm13, %v2159_v34, %v861_v29  ;;  %v1011_v6 = vsub.f32 1.0, %v1010_v35  ;;  %v1234_v27 = vand.u32 2147483647, %v2882_v54  ;;  %v884_v35 = vor.u32 1.1754944e-38, %v883_v28 }
 0x12f   :  { %v870_v41 = vsel %vm2849_vm4, %v869_v3, %v865_v33  ;;  %v1218_v17 = vsel %vm1217_vm1, %v2161_v5, %v1214_v8  ;;  %v1364_v42 = vsub.f32 1.0, %v1363_v47  ;;  %vm2926_vm4 = vmor %vm1014_vm9, %vm1015_vm2  ;;  %vm1230_vm5 = vweird.f32 %v2882_v54 }
 0x130   :  { %v2171_v13 = vpop.eup %2170  ;;  %1130 = vst.msk [vmem:[#allocation2] sm:$0xff] %vm1129_vm6, %v870_v41  ;;  %v1138_v29 = vsub.f32 1.0, %v870_v41  ;;  %v1223_v9 = vsel %vm2871_vm8, %v2853_v23, %v1218_v17  ;;  %v1012_v34 = vmul.f32 %v2167_v60, %v1011_v6  ;;  %vm2936_vm8 = vmor %vm1367_vm10, %vm1368_vm3  ;;  %v1236_v24 = vand.u32 2147483648, %v2882_v54 }
 0x131   :  { %1482 = vst.msk [vmem:[#allocation5] sm:$0xff] %vm1129_vm6, %v1223_v9  ;;  %v1490_v55 = vsub.f32 1.0, %v1223_v9  ;;  %v1365_v3 = vmul.f32 %v2169_v39, %v1364_v42  ;;  %v873_v5 = vmul.f32 %v2171_v13, %v2879_v43  ;;  %v2173_v12 = vpop.eup %2172  ;;  %vm878_vm9 = vweird.f32 %v2171_v13  ;;  %v648_v42 = vpop.f32.mrf.mxu2 }
 0x132   :  { %v1146_v23 = vmul.f32 %v2809_v0, %v1138_v29  ;;  %v1013_v40 = vadd.f32 %v2167_v60, %v1012_v34  ;;  %v1226_v41 = vmul.f32 %v2173_v12, %v2882_v54  ;;  %vm2943_vm11 = vcmp.eq.f32.partialorder %v1234_v27, 8.507059e+37  ;;  %vm2963_vm13 = vmor %vm877_vm15, %vm878_vm9 }
 0x133   :  { %v1498_v8 = vmul.f32 %v2813_v22, %v1490_v55  ;;  %v1366_v33 = vadd.f32 %v2169_v39, %v1365_v3  ;;  %v874_v6 = vsub.f32 1.0, %v873_v5  ;;  %vm1231_vm10 = vweird.f32 %v2173_v12  ;;  %v689_v22 = vpop.f32.mrf.mxu3  ;;  %v569_v55 = vpop.f32.mrf.mxu0 }
 0x134   :  { %1154 = vst.msk [vmem:[#allocation3] sm:$0xff] %vm1129_vm6, %v1146_v23  ;;  %v1017_v0 = vsel %vm2926_vm4, %v2167_v60, %v1013_v40  ;;  %2174 = vpow2.f32 %v2103_v58  ;;  %v783_v26 = vadd.f32 %v2789_v62, %v2861_v2  ;;  %v1227_v34 = vsub.f32 1.0, %v1226_v41  ;;  %v610_v41 = vpop.f32.mrf.mxu1 }
 0x135   :  { %1506 = vst.msk [vmem:[#allocation6] sm:$0xff] %vm1129_vm6, %v1498_v8  ;;  %v1022_v27 = vsel %vm2884_vm12, %v1021_v21, %v1017_v0  ;;  %v1370_v29 = vsel %vm2936_vm8, %v2169_v39, %v1366_v33  ;;  %v875_v9 = vmul.f32 %v2171_v13, %v874_v6  ;;  %2176 = vpow2.f32 %v2119_v32  ;;  %vm1232_vm12 = vmor %vm1230_vm5, %vm1231_vm10 }
 0x136   :  { %1162 = vst.msk [vmem:[#allocation4] sm:$0xff] %vm1129_vm6, %v1022_v27  ;;  %v1375_v60 = vsel %vm2896_vm14, %v1374_v57, %v1370_v29  ;;  %v2096_v50 = vmul.f32 -1.442695, %v783_v26  ;;  %v784_v21 = vadd.f32 %v2791_v63, %v2864_v36  ;;  %v1228_v47 = vmul.f32 %v2173_v12, %v1227_v34 }
 0x137   :  { %v1522_v58 = vld [vmem:[#allocation2] sm:$0xff]  ;;  %1514 = vst.msk [vmem:[#allocation7] sm:$0xff] %vm1129_vm6, %v1375_v60  ;;  %v876_v39 = vadd.f32 %v2171_v13, %v875_v9  ;;  %v723_v16 = vadd.f32 %v648_v42, %v2742_v7  ;;  %v724_v57 = vadd.f32 %v689_v22, %v2744_v4  ;;  %v727_v5 = vadd.f32 %v569_v55, %v2662_v44 }
 0x138   :  { %v1523_v3 = vmul.f32 0.0, %v1522_v58  ;;  %2178 = vpow2.f32 %v2096_v50  ;;  %v2112_v43 = vmul.f32 -1.442695, %v784_v21  ;;  %v1229_v23 = vadd.f32 %v2173_v12, %v1228_v47 }
 0x139   :  { %v880_v32 = vsel %vm2963_vm13, %v2171_v13, %v876_v39  ;;  %v1237_v40 = vor.u32 1.1754944e-38, %v1236_v24  ;;  %v785_v36 = vadd.f32 %v2807_v51, %v723_v16  ;;  %v786_v7 = vadd.f32 %v2805_v1, %v724_v57 }
 0x13a   :  { %v2175_v28 = vpop.eup %2174  ;;  %v885_v8 = vsel %vm2913_vm7, %v884_v35, %v880_v32  ;;  %2180 = vpow2.f32 %v2112_v43  ;;  %v789_v44 = vadd.f32 %v2789_v62, %v727_v5  ;;  %v1233_v24 = vsel %vm1232_vm12, %v2173_v12, %v1229_v23 }
 0x13b   :  { %v1524_v4 = vld [vmem:[#allocation3] sm:$0xff]  ;;  %1131 = vst.msk [vmem:[#allocation2 + $0x8] sm:$0xff] %vm1129_vm6, %v885_v8  ;;  %v1139_v13 = vsub.f32 1.0, %v885_v8  ;;  %v2984_v33 = vadd.f32 1.0, %v2175_v28  ;;  %v2104_v6 = vmul.f32 -1.442695, %v785_v36  ;;  %v2177_v56 = vpop.eup %2176  ;;  %2182 = vtanh.f32 %v2769_v31 }
 0x13c   :  { %v1525_v35 = vadd.f32 %v1524_v4, %v1523_v3  ;;  %v1238_v54 = vsel %vm2943_vm11, %v1237_v40, %v1233_v24  ;;  %v2992_v27 = vadd.f32 1.0, %v2177_v56  ;;  %v2120_v29 = vmul.f32 -1.442695, %v786_v7  ;;  %v651_v7 = vpop.f32.mrf.mxu2 }
 0x13d   :  { %v1532_v0 = vld [vmem:[#allocation4] sm:$0xff]  ;;  %v1147_v26 = vmul.f32 %v2817_v25, %v1139_v13  ;;  %1483 = vst.msk [vmem:[#allocation5 + $0x8] sm:$0xff] %vm1129_vm6, %v1238_v54  ;;  %v1491_v42 = vsub.f32 1.0, %v1238_v54  ;;  %2184 = vrcp.f32 %v2984_v33  ;;  %v728_v9 = vadd.f32 %v610_v41, %v2664_v45 }
 0x13e   :  { %v2179_v12 = vpop.eup %2178  ;;  %v1533_v22 = vmul.f32 %v1532_v0, %v1525_v35  ;;  %2186 = vpow2.f32 %v2104_v6  ;;  %v2097_v25 = vmul.f32 -1.442695, %v789_v44  ;;  %v1033_v55 = vand.u32 2147483647, %v2984_v33 }
 0x13f   :  { %1155 = vst.msk [vmem:[#allocation3 + $0x8] sm:$0xff] %vm1129_vm6, %v1147_v26  ;;  %v1499_v31 = vmul.f32 %v2819_v61, %v1491_v42  ;;  %v2997_v17 = vadd.f32 1.0, %v2179_v12  ;;  %v1035_v60 = vand.u32 2147483648, %v2984_v33  ;;  %2188 = vrcp.f32 %v2992_v27 }
 0x140   :  { %v2181_v34 = vpop.eup %2180  ;;  %1534 = vst.msk [vmem:[#allocation4] sm:$0xff] %vm1129_vm6, %v1533_v22  ;;  %v1388_v2 = vand.u32 2147483648, %v2992_v27  ;;  %v790_v21 = vadd.f32 %v2791_v63, %v728_v9  ;;  %v1386_v39 = vand.u32 2147483647, %v2992_v27  ;;  %vm1029_vm14 = vweird.f32 %v2984_v33 }
 0x141   :  { %1507 = vst.msk [vmem:[#allocation6 + $0x8] sm:$0xff] %vm1129_vm6, %v1499_v31  ;;  %2190 = vrcp.f32 %v2997_v17  ;;  %v3005_v45 = vpop.eup %2182  ;;  %v3008_v50 = vadd.f32 1.0, %v2181_v34  ;;  %v896_v47 = vand.u32 2147483647, %v2997_v17  ;;  %v898_v16 = vand.u32 2147483648, %v2997_v17 }
 0x142   :  { %v1540_v61 = vld [vmem:[#allocation2 + $0x8] sm:$0xff]  ;;  %2192 = vpow2.f32 %v2120_v29  ;;  %vm3016_vm15 = vcmp.eq.f32.partialorder %v1033_v55, 8.507059e+37  ;;  %v1036_v43 = vor.u32 1.1754944e-38, %v1035_v60  ;;  %vm1382_vm1 = vweird.f32 %v2992_v27 }
 0x143   :  { %v2185_v58 = vpop.eup %2184  ;;  %2194 = vpow2.f32 %v2097_v25  ;;  %v1541_v32 = vmul.f32 %v1540_v61, %v1525_v35  ;;  %vm892_vm2 = vweird.f32 %v2997_v17  ;;  %v1389_v28 = vor.u32 1.1754944e-38, %v1388_v2 }
 0x144   :  { %v1025_v57 = vmul.f32 %v2185_v58, %v2984_v33  ;;  %v2187_v5 = vpop.eup %2186  ;;  %2196 = vrcp.f32 %v3008_v50  ;;  %vm1030_vm3 = vweird.f32 %v2185_v58  ;;  %vm3026_vm7 = vcmp.eq.f32.partialorder %v1386_v39, 8.507059e+37 }
 0x145   :  { %v2189_v23 = vpop.eup %2188  ;;  %v3023_v8 = vadd.f32 1.0, %v2187_v5  ;;  %vm3030_vm4 = vcmp.eq.f32.partialorder %v896_v47, 8.507059e+37  ;;  %v899_v6 = vor.u32 1.1754944e-38, %v898_v16  ;;  %v2113_v41 = vmul.f32 -1.442695, %v790_v21  ;;  %vm3040_vm5 = vmor %vm1029_vm14, %vm1030_vm3 }
 0x146   :  { %v1026_v40 = vsub.f32 1.0, %v1025_v57  ;;  %v1543_v36 = vld [vmem:[#allocation3 + $0x8] sm:$0xff]  ;;  %v1378_v4 = vmul.f32 %v2189_v23, %v2992_v27  ;;  %v1249_v0 = vand.u32 2147483647, %v3008_v50  ;;  %v1251_v26 = vand.u32 2147483648, %v3008_v50 }
 0x147   :  { %v2191_v44 = vpop.eup %2190  ;;  %v3044_v22 = vadd.f32 %v1543_v36, %v1541_v32  ;;  %2198 = vrcp.f32 %v3023_v8  ;;  %v3048_v9 = vadd.f32 %v651_v7, %v2746_v10  ;;  %vm1245_vm9 = vweird.f32 %v3008_v50 }
 0x148   :  { %v2193_v56 = vpop.eup %2192  ;;  %v1027_v35 = vmul.f32 %v2185_v58, %v1026_v40  ;;  %v888_v54 = vmul.f32 %v2191_v44, %v2997_v17  ;;  %v1379_v29 = vsub.f32 1.0, %v1378_v4  ;;  %vm893_vm8 = vweird.f32 %v2191_v44 }
 0x149   :  { %v2195_v42 = vpop.eup %2194  ;;  %v3051_v34 = vadd.f32 1.0, %v2193_v56  ;;  %vm1383_vm11 = vweird.f32 %v2189_v23  ;;  %2200 = vpow2.f32 %v2113_v41  ;;  %v1048_v21 = vand.u32 2147483647, %v3023_v8  ;;  %vm3063_vm10 = vmor %vm892_vm2, %vm893_vm8  ;;  %v692_v41 = vpop.f32.mrf.mxu3 }
 0x14a   :  { %v1028_v31 = vadd.f32 %v2185_v58, %v1027_v35  ;;  %v889_v25 = vsub.f32 1.0, %v888_v54  ;;  %v2197_v33 = vpop.eup %2196  ;;  %v1380_v55 = vmul.f32 %v2189_v23, %v1379_v29  ;;  %v3053_v60 = vadd.f32 1.0, %v2195_v42  ;;  %vm1384_vm13 = vmor %vm1382_vm1, %vm1383_vm11  ;;  %v572_v42 = vpop.f32.mrf.mxu0 }
 0x14b   :  { %v1241_v10 = vmul.f32 %v2197_v33, %v3008_v50  ;;  %v1050_v57 = vand.u32 2147483648, %v3023_v8  ;;  %2202 = vrcp.f32 %v3051_v34  ;;  %vm3072_vm12 = vcmp.eq.f32.partialorder %v1249_v0, 8.507059e+37 }
 0x14c   :  { %v1032_v61 = vsel %vm3040_vm5, %v2185_v58, %v1028_v31  ;;  %v890_v2 = vmul.f32 %v2191_v44, %v889_v25  ;;  %v1381_v47 = vadd.f32 %v2189_v23, %v1380_v55  ;;  %v1252_v17 = vor.u32 1.1754944e-38, %v1251_v26 }
 0x14d   :  { %v1037_v39 = vsel %vm3016_vm15, %v1036_v43, %v1032_v61  ;;  %v1242_v5 = vsub.f32 1.0, %v1241_v10  ;;  %v2199_v43 = vpop.eup %2198  ;;  %vm1246_vm14 = vweird.f32 %v2197_v33  ;;  %v1401_v40 = vand.u32 2147483647, %v3051_v34 }
 0x14e   :  { %1163 = vst.msk [vmem:[#allocation4 + $0x8] sm:$0xff] %vm1129_vm6, %v1037_v39  ;;  %v891_v58 = vadd.f32 %v2191_v44, %v890_v2  ;;  %v1385_v32 = vsel %vm1384_vm13, %v2189_v23, %v1381_v47  ;;  %2204 = vrcp.f32 %v3053_v60  ;;  %v1040_v4 = vmul.f32 %v2199_v43, %v3023_v8 }
 0x14f   :  { %v1390_v36 = vsel %vm3026_vm7, %v1389_v28, %v1385_v32  ;;  %v1243_v7 = vmul.f32 %v2197_v33, %v1242_v5  ;;  %v2201_v56 = vpop.eup %2200  ;;  %vm1044_vm15 = vweird.f32 %v3023_v8  ;;  %vm3087_vm1 = vcmp.eq.f32.partialorder %v1048_v21, 8.507059e+37  ;;  %vm1247_vm7 = vmor %vm1245_vm9, %vm1246_vm14  ;;  %v613_v5 = vpop.f32.mrf.mxu1 }
 0x150   :  { %v895_v27 = vsel %vm3063_vm10, %v2191_v44, %v891_v58  ;;  %1515 = vst.msk [vmem:[#allocation7 + $0x8] sm:$0xff] %vm1129_vm6, %v1390_v36  ;;  %v1051_v28 = vor.u32 1.1754944e-38, %v1050_v57  ;;  %v1041_v54 = vsub.f32 1.0, %v1040_v4  ;;  %vm1045_vm2 = vweird.f32 %v2199_v43 }
 0x151   :  { %v900_v23 = vsel %vm3030_vm4, %v899_v6, %v895_v27  ;;  %v1244_v13 = vadd.f32 %v2197_v33, %v1243_v7  ;;  %vm1397_vm3 = vweird.f32 %v3051_v34  ;;  %v2203_v0 = vpop.eup %2202  ;;  %v1403_v24 = vand.u32 2147483648, %v3051_v34  ;;  %vm3114_vm8 = vmor %vm1044_vm15, %vm1045_vm2  ;;  %v654_v7 = vpop.f32.mrf.mxu2 }
 0x152   :  { %1132 = vst.msk [vmem:[#allocation2 + $0x10] sm:$0xff] %vm1129_vm6, %v900_v23  ;;  %v1140_v44 = vsub.f32 1.0, %v900_v23  ;;  %vm907_vm4 = vweird.f32 %v3053_v60  ;;  %v911_v6 = vand.u32 2147483647, %v3053_v60  ;;  %v3099_v26 = vadd.f32 1.0, %v2201_v56  ;;  %v695_v56 = vpop.f32.mrf.mxu3 }
 0x153   :  { %v1248_v29 = vsel %vm1247_vm7, %v2197_v33, %v1244_v13  ;;  %v1042_v31 = vmul.f32 %v2199_v43, %v1041_v54  ;;  %v1393_v25 = vmul.f32 %v2203_v0, %v3051_v34  ;;  %vm3103_vm5 = vcmp.eq.f32.partialorder %v1401_v40, 8.507059e+37 }
 0x154   :  { %v1148_v12 = vmul.f32 %v2825_v37, %v1140_v44  ;;  %v3107_v50 = vpop.eup %2204  ;;  %v1253_v2 = vsel %vm3072_vm12, %v1252_v17, %v1248_v29  ;;  %v913_v37 = vand.u32 2147483648, %v3053_v60  ;;  %v791_v33 = vadd.f32 %v2807_v51, %v3048_v9 }
 0x155   :  { %v1552_v61 = vld [vmem:[#allocation4 + $0x8] sm:$0xff]  ;;  %v730_v21 = vadd.f32 %v692_v41, %v2748_v11  ;;  %v1492_v47 = vsub.f32 1.0, %v1253_v2  ;;  %v1043_v16 = vadd.f32 %v2199_v43, %v1042_v31  ;;  %v1394_v57 = vsub.f32 1.0, %v1393_v25  ;;  %1484 = vst.msk [vmem:[#allocation5 + $0x10] sm:$0xff] %vm1129_vm6, %v1253_v2 }
 0x156   :  { %v1553_v39 = vmul.f32 %v1552_v61, %v3044_v22  ;;  %1156 = vst.msk [vmem:[#allocation3 + $0x10] sm:$0xff] %vm1129_vm6, %v1148_v12  ;;  %vm1398_vm9 = vweird.f32 %v2203_v0  ;;  %v1404_v8 = vor.u32 1.1754944e-38, %v1403_v24  ;;  %v903_v58 = vmul.f32 %v3107_v50, %v3053_v60 }
 0x157   :  { %2206 = vrcp.f32 %v3099_v26  ;;  %v1500_v11 = vmul.f32 %v2830_v38, %v1492_v47  ;;  %v1047_v9 = vsel %vm3114_vm8, %v2199_v43, %v1043_v16  ;;  %v1395_v3 = vmul.f32 %v2203_v0, %v1394_v57  ;;  %vm1399_vm13 = vmor %vm1397_vm3, %vm1398_vm9  ;;  %v616_v47 = vpop.f32.mrf.mxu1 }
 0x158   :  { %1554 = vst.msk [vmem:[#allocation4 + $0x8] sm:$0xff] %vm1129_vm6, %v1553_v39  ;;  %vm3132_vm11 = vcmp.eq.f32.partialorder %v911_v6, 8.507059e+37  ;;  %v1052_v32 = vsel %vm3087_vm1, %v1051_v28, %v1047_v9  ;;  %v904_v36 = vsub.f32 1.0, %v903_v58  ;;  %vm908_vm10 = vweird.f32 %v3107_v50 }
 0x159   :  { %v1560_v40 = vld [vmem:[#allocation2 + $0x10] sm:$0xff]  ;;  %v2105_v27 = vmul.f32 -1.442695, %v791_v33  ;;  %1508 = vst.msk [vmem:[#allocation6 + $0x10] sm:$0xff] %vm1129_vm6, %v1500_v11  ;;  %v1396_v38 = vadd.f32 %v2203_v0, %v1395_v3  ;;  %v914_v4 = vor.u32 1.1754944e-38, %v913_v37  ;;  %v792_v41 = vadd.f32 %v2805_v1, %v730_v21  ;;  %vm3153_vm12 = vmor %vm907_vm4, %vm908_vm10 }
 0x15a   :  { %v1264_v43 = vand.u32 2147483647, %v3099_v26  ;;  %1164 = vst.msk [vmem:[#allocation4 + $0x10] sm:$0xff] %vm1129_vm6, %v1052_v32  ;;  %v1561_v23 = vmul.f32 %v1560_v40, %v3044_v22  ;;  %v905_v35 = vmul.f32 %v3107_v50, %v904_v36  ;;  %v733_v28 = vadd.f32 %v572_v42, %v2678_v48  ;;  %v575_v42 = vpop.f32.mrf.mxu0 }
 0x15b   :  { %2208 = vpow2.f32 %v2105_v27  ;;  %v1400_v44 = vsel %vm1399_vm13, %v2203_v0, %v1396_v38  ;;  %v2121_v54 = vmul.f32 -1.442695, %v792_v41  ;;  %v734_v22 = vadd.f32 %v613_v5, %v2680_v49 }
 0x15c   :  { %v735_v34 = vadd.f32 %v654_v7, %v2750_v14  ;;  %v1405_v12 = vsel %vm3103_vm5, %v1404_v8, %v1400_v44  ;;  %v906_v48 = vadd.f32 %v3107_v50, %v905_v35  ;;  %v795_v0 = vadd.f32 %v2789_v62, %v733_v28 }
 0x15d   :  { %v2207_v24 = vpop.eup %2206  ;;  %v1563_v6 = vld [vmem:[#allocation3 + $0x10] sm:$0xff]  ;;  %v736_v60 = vadd.f32 %v695_v56, %v2752_v15  ;;  %1516 = vst.msk [vmem:[#allocation7 + $0x10] sm:$0xff] %vm1129_vm6, %v1405_v12  ;;  %v1266_v14 = vand.u32 2147483648, %v3099_v26  ;;  %2210 = vpow2.f32 %v2121_v54  ;;  %v796_v55 = vadd.f32 %v2791_v63, %v734_v22 }
 0x15e   :  { %v3164_v29 = vadd.f32 %v1563_v6, %v1561_v23  ;;  %v1256_v49 = vmul.f32 %v2207_v24, %v3099_v26  ;;  %v910_v31 = vsel %vm3153_vm12, %v3107_v50, %v906_v48  ;;  %v2098_v25 = vmul.f32 -1.442695, %v795_v0 }
 0x15f   :  { %v797_v61 = vadd.f32 %v2807_v51, %v735_v34  ;;  %v915_v15 = vsel %vm3132_vm11, %v914_v4, %v910_v31  ;;  %v798_v10 = vadd.f32 %v2805_v1, %v736_v60  ;;  %v739_v37 = vadd.f32 %v575_v42, %v2694_v52 }
 0x160   :  { %v1257_v2 = vsub.f32 1.0, %v1256_v49  ;;  %1133 = vst.msk [vmem:[#allocation2 + $0x18] sm:$0xff] %vm1129_vm6, %v915_v15  ;;  %v1141_v21 = vsub.f32 1.0, %v915_v15  ;;  %2212 = vpow2.f32 %v2098_v25  ;;  %v2114_v39 = vmul.f32 -1.442695, %v796_v55 }
 0x161   :  { %v2209_v33 = vpop.eup %2208  ;;  %v2106_v50 = vmul.f32 -1.442695, %v797_v61  ;;  %v1572_v16 = vld [vmem:[#allocation4 + $0x10] sm:$0xff]  ;;  %vm1261_vm14 = vweird.f32 %v2207_v24  ;;  %v801_v58 = vadd.f32 %v2789_v62, %v739_v37  ;;  %vm1260_vm15 = vweird.f32 %v3099_v26 }
 0x162   :  { %v1258_v57 = vmul.f32 %v2207_v24, %v1257_v2  ;;  %v3179_v8 = vadd.f32 1.0, %v2209_v33  ;;  %v1573_v5 = vmul.f32 %v1572_v16, %v3164_v29  ;;  %v1149_v11 = vmul.f32 %v2833_v59, %v1141_v21  ;;  %vm1262_vm1 = vmor %vm1260_vm15, %vm1261_vm14 }
 0x163   :  { %2214 = vpow2.f32 %v2114_v39  ;;  %v2211_v52 = vpop.eup %2210  ;;  %v2122_v3 = vmul.f32 -1.442695, %v798_v10  ;;  %v740_v17 = vadd.f32 %v616_v47, %v2696_v53  ;;  %v1267_v32 = vor.u32 1.1754944e-38, %v1266_v14 }
 0x164   :  { %v1259_v9 = vadd.f32 %v2207_v24, %v1258_v57  ;;  %2216 = vrcp.f32 %v3179_v8  ;;  %1574 = vst.msk [vmem:[#allocation4 + $0x10] sm:$0xff] %vm1129_vm6, %v1573_v5  ;;  %v3188_v40 = vadd.f32 1.0, %v2211_v52  ;;  %v2099_v36 = vmul.f32 -1.442695, %v801_v58 }
 0x165   :  { %2218 = vpow2.f32 %v2106_v50  ;;  %1157 = vst.msk [vmem:[#allocation3 + $0x18] sm:$0xff] %vm1129_vm6, %v1149_v11  ;;  %vm1265_vm2 = vcmp.eq.f32.partialorder %v1264_v43, 8.507059e+37  ;;  %v1063_v53 = vand.u32 2147483647, %v3179_v8  ;;  %v1065_v38 = vand.u32 2147483648, %v3179_v8  ;;  %v657_v43 = vpop.f32.mrf.mxu2 }
 0x166   :  { %2220 = vtanh.f32 %v2777_v46  ;;  %v1263_v59 = vsel %vm1262_vm1, %v2207_v24, %v1259_v9  ;;  %v2213_v27 = vpop.eup %2212  ;;  %v802_v46 = vadd.f32 %v2791_v63, %v740_v17  ;;  %vm1059_vm3 = vweird.f32 %v3179_v8 }
 0x167   :  { %v1268_v7 = vsel %vm1265_vm2, %v1267_v32, %v1263_v59  ;;  %2222 = vrcp.f32 %v3188_v40  ;;  %v1580_v56 = vld [vmem:[#allocation2 + $0x18] sm:$0xff]  ;;  %v3200_v26 = vadd.f32 1.0, %v2213_v27  ;;  %v1416_v28 = vand.u32 2147483647, %v3188_v40 }
 0x168   :  { %1485 = vst.msk [vmem:[#allocation5 + $0x18] sm:$0xff] %vm1129_vm6, %v1268_v7  ;;  %v1493_v4 = vsub.f32 1.0, %v1268_v7  ;;  %2224 = vpow2.f32 %v2122_v3  ;;  %v1418_v44 = vand.u32 2147483648, %v3188_v40  ;;  %vm3208_vm7 = vcmp.eq.f32.partialorder %v1063_v53, 8.507059e+37 }
 0x169   :  { %v2215_v41 = vpop.eup %2214  ;;  %2226 = vpow2.f32 %v2099_v36  ;;  %v1066_v24 = vor.u32 1.1754944e-38, %v1065_v38  ;;  %vm1412_vm4 = vweird.f32 %v3188_v40  ;;  %v3219_v12 = vmul.f32 -1.442695, %v802_v46 }
 0x16a   :  { %v2217_v23 = vpop.eup %2216  ;;  %v1501_v35 = vmul.f32 %v2839_v30, %v1493_v4  ;;  %v3205_v13 = vadd.f32 1.0, %v2215_v41  ;;  %2228 = vrcp.f32 %v3200_v26  ;;  %v1581_v30 = vmul.f32 %v1580_v56, %v3164_v29 }
 0x16b   :  { %v2219_v54 = vpop.eup %2218  ;;  %v1055_v22 = vmul.f32 %v2217_v23, %v3179_v8  ;;  %v3222_v48 = vadd.f32 %v657_v43, %v2754_v18  ;;  %vm1060_vm5 = vweird.f32 %v2217_v23  ;;  %v926_v49 = vand.u32 2147483647, %v3200_v26 }
 0x16c   :  { %v3213_v6 = vpop.eup %2220  ;;  %1509 = vst.msk [vmem:[#allocation6 + $0x18] sm:$0xff] %vm1129_vm6, %v1501_v35  ;;  %2230 = vrcp.f32 %v3205_v13  ;;  %v1583_v42 = vld [vmem:[#allocation3 + $0x18] sm:$0xff]  ;;  %v3225_v14 = vadd.f32 1.0, %v2219_v54  ;;  %vm3228_vm8 = vcmp.eq.f32.partialorder %v1416_v28, 8.507059e+37  ;;  %v1419_v55 = vor.u32 1.1754944e-38, %v1418_v44  ;;  %vm3238_vm11 = vmor %vm1059_vm3, %vm1060_vm5  ;;  %v698_v28 = vpop.f32.mrf.mxu3 }
 0x16d   :  { %v2223_v0 = vpop.eup %2222  ;;  %v1056_v60 = vsub.f32 1.0, %v1055_v22  ;;  %v928_v61 = vand.u32 2147483648, %v3200_v26  ;;  %vm922_vm9 = vweird.f32 %v3200_v26  ;;  %v1279_v2 = vand.u32 2147483647, %v3205_v13 }
 0x16e   :  { %v2225_v31 = vpop.eup %2224  ;;  %v1408_v29 = vmul.f32 %v2223_v0, %v3188_v40  ;;  %v1281_v10 = vand.u32 2147483648, %v3205_v13  ;;  %v3242_v33 = vadd.f32 %v1583_v42, %v1581_v30  ;;  %vm1413_vm10 = vweird.f32 %v2223_v0 }
 0x16f   :  { %v2227_v18 = vpop.eup %2226  ;;  %v1057_v15 = vmul.f32 %v2217_v23, %v1056_v60  ;;  %2232 = vrcp.f32 %v3225_v14  ;;  %vm3245_vm13 = vcmp.eq.f32.partialorder %v926_v49, 8.507059e+37  ;;  %vm1275_vm12 = vweird.f32 %v3205_v13  ;;  %vm1414_vm1 = vmor %vm1412_vm4, %vm1413_vm10 }
 0x170   :  { %v1409_v21 = vsub.f32 1.0, %v1408_v29  ;;  %v2229_v39 = vpop.eup %2228  ;;  %v1078_v16 = vand.u32 2147483647, %v3225_v14  ;;  %v3251_v57 = vadd.f32 1.0, %v2225_v31  ;;  %v929_v11 = vor.u32 1.1754944e-38, %v928_v61 }
 0x171   :  { %v1058_v50 = vadd.f32 %v2217_v23, %v1057_v15  ;;  %v918_v5 = vmul.f32 %v2229_v39, %v3200_v26  ;;  %v3254_v52 = vadd.f32 1.0, %v2227_v18  ;;  %vm923_vm14 = vweird.f32 %v2229_v39 }
 0x172   :  { %v2231_v8 = vpop.eup %2230  ;;  %v1410_v58 = vmul.f32 %v2223_v0, %v1409_v21  ;;  %vm3259_vm15 = vcmp.eq.f32.partialorder %v1279_v2, 8.507059e+37  ;;  %v1080_v32 = vand.u32 2147483648, %v3225_v14  ;;  %2234 = vrcp.f32 %v3251_v57  ;;  %vm3282_vm4 = vmor %vm922_vm9, %vm923_vm14  ;;  %v619_v21 = vpop.f32.mrf.mxu1 }
 0x173   :  { %v1062_v9 = vsel %vm3238_vm11, %v2217_v23, %v1058_v50  ;;  %v1271_v3 = vmul.f32 %v2231_v8, %v3205_v13  ;;  %v919_v27 = vsub.f32 1.0, %v918_v5  ;;  %v1282_v53 = vor.u32 1.1754944e-38, %v1281_v10 }
 0x174   :  { %v1067_v36 = vsel %vm3208_vm7, %v1066_v24, %v1062_v9  ;;  %v1411_v59 = vadd.f32 %v2223_v0, %v1410_v58  ;;  %vm1074_vm2 = vweird.f32 %v3225_v14  ;;  %vm3272_vm3 = vcmp.eq.f32.partialorder %v1078_v16, 8.507059e+37  ;;  %v578_v24 = vpop.f32.mrf.mxu0 }
 0x175   :  { %1165 = vst.msk [vmem:[#allocation4 + $0x18] sm:$0xff] %vm1129_vm6, %v1067_v36  ;;  %v1272_v7 = vsub.f32 1.0, %v1271_v3  ;;  %v2233_v4 = vpop.eup %2232  ;;  %v920_v41 = vmul.f32 %v2229_v39, %v919_v27  ;;  %vm1276_vm7 = vweird.f32 %v2231_v8  ;;  %2236 = vrcp.f32 %v3254_v52  ;;  %v3749_v36 = vld [vmem:[#allocation14_spill] sm:$0xff] }
 0x176   :  { %v1415_v46 = vsel %vm1414_vm1, %v2223_v0, %v1411_v59  ;;  %v1070_v23 = vmul.f32 %v2233_v4, %v3225_v14  ;;  %v1081_v35 = vor.u32 1.1754944e-38, %v1080_v32  ;;  %v1431_v54 = vand.u32 2147483647, %v3251_v57  ;;  %vm1277_vm11 = vmor %vm1275_vm12, %vm1276_vm7 }
 0x177   :  { %v1420_v56 = vsel %vm3228_vm8, %v1419_v55, %v1415_v46  ;;  %v1273_v43 = vmul.f32 %v2231_v8, %v1272_v7  ;;  %v921_v44 = vadd.f32 %v2229_v39, %v920_v41  ;;  %v1433_v22 = vand.u32 2147483648, %v3251_v57 }
 0x178   :  { %1517 = vst.msk [vmem:[#allocation7 + $0x18] sm:$0xff] %vm1129_vm6, %v1420_v56  ;;  %vm937_vm5 = vweird.f32 %v3254_v52  ;;  %v1071_v26 = vsub.f32 1.0, %v1070_v23  ;;  %vm1075_vm8 = vweird.f32 %v2233_v4  ;;  %vm1427_vm9 = vweird.f32 %v3251_v57  ;;  %v2235_v30 = vpop.eup %2234  ;;  %v701_v56 = vpop.f32.mrf.mxu3 }
 0x179   :  { %v1274_v34 = vadd.f32 %v2231_v8, %v1273_v43  ;;  %2238 = vpow2.f32 %v3219_v12  ;;  %v925_v0 = vsel %vm3282_vm4, %v2229_v39, %v921_v44  ;;  %v941_v60 = vand.u32 2147483647, %v3254_v52  ;;  %vm3313_vm10 = vmor %vm1074_vm2, %vm1075_vm8  ;;  %v3753_v44 = vld [vmem:[#allocation17_spill] sm:$0xff] }
 0x17a   :  { %v803_v42 = vadd.f32 %v2807_v51, %v3222_v48  ;;  %v742_v49 = vadd.f32 %v698_v28, %v2756_v20  ;;  %v930_v31 = vsel %vm3245_vm13, %v929_v11, %v925_v0  ;;  %v1072_v29 = vmul.f32 %v2233_v4, %v1071_v26  ;;  %v3755_v0 = vld [vmem:[#allocation15_spill] sm:$0xff] }
 0x17b   :  { %v1278_v12 = vsel %vm1277_vm11, %v2231_v8, %v1274_v34  ;;  %v1423_v25 = vmul.f32 %v2235_v30, %v3251_v57  ;;  %v3305_v55 = vpop.eup %2236  ;;  %1134 = vst.msk [vmem:[#allocation2 + $0x20] sm:$0xff] %vm1129_vm6, %v930_v31  ;;  %v1142_v13 = vsub.f32 1.0, %v930_v31  ;;  %vm1428_vm13 = vweird.f32 %v2235_v30 }
 0x17c   :  { %v1592_v61 = vld [vmem:[#allocation4 + $0x18] sm:$0xff]  ;;  %v1283_v18 = vsel %vm3259_vm15, %v1282_v53, %v1278_v12  ;;  %v943_v48 = vand.u32 2147483648, %v3254_v52  ;;  %v1073_v10 = vadd.f32 %v2233_v4, %v1072_v29  ;;  %v933_v14 = vmul.f32 %v3305_v55, %v3254_v52  ;;  %vm1429_vm14 = vmor %vm1427_vm9, %vm1428_vm13  ;;  %v660_v53 = vpop.f32.mrf.mxu2  ;;  %v581_v40 = vpop.f32.mrf.mxu0 }
 0x17d   :  { %v1593_v15 = vmul.f32 %v1592_v61, %v3242_v33  ;;  %1486 = vst.msk [vmem:[#allocation5 + $0x20] sm:$0xff] %vm1129_vm6, %v1283_v18  ;;  %v1494_v2 = vsub.f32 1.0, %v1283_v18  ;;  %v1424_v37 = vsub.f32 1.0, %v1423_v25  ;;  %v1150_v39 = vmul.f32 %v2847_v19, %v1142_v13  ;;  %v622_v29 = vpop.f32.mrf.mxu1 }
 0x17e   :  { %vm938_vm12 = vweird.f32 %v3305_v55  ;;  %v2107_v50 = vmul.f32 -1.442695, %v803_v42  ;;  %v1077_v8 = vsel %vm3313_vm10, %v2233_v4, %v1073_v10  ;;  %v804_v5 = vadd.f32 %v2805_v1, %v742_v49 }
 0x17f   :  { %v2239_v47 = vpop.eup %2238  ;;  %1594 = vst.msk [vmem:[#allocation4 + $0x18] sm:$0xff] %vm1129_vm6, %v1593_v15  ;;  %v1502_v16 = vmul.f32 %v3005_v45, %v1494_v2  ;;  %v1425_v58 = vmul.f32 %v2235_v30, %v1424_v37  ;;  %v1082_v19 = vsel %vm3272_vm3, %v1081_v35, %v1077_v8  ;;  %v934_v11 = vsub.f32 1.0, %v933_v14  ;;  %v3748_v45 = vld [vmem:[#allocation13_spill] sm:$0xff]  ;;  %vm3347_vm1 = vmor %vm937_vm5, %vm938_vm12  ;;  %v3756_v37 = vld [vmem:[#allocation16_spill] sm:$0xff] }
 0x180   :  { %1158 = vst.msk [vmem:[#allocation3 + $0x20] sm:$0xff] %vm1129_vm6, %v1150_v39  ;;  %v3332_v9 = vadd.f32 1.0, %v2239_v47  ;;  %2240 = vpow2.f32 %v2107_v50  ;;  %v2123_v17 = vmul.f32 -1.442695, %v804_v5  ;;  %v745_v32 = vadd.f32 %v578_v24, %v3748_v45  ;;  %v3752_v35 = vld [vmem:[#allocation21_spill] sm:$0xff]  ;;  %v3754_v24 = vld [vmem:[#allocation18_spill] sm:$0xff] }
 0x181   :  { %1510 = vst.msk [vmem:[#allocation6 + $0x20] sm:$0xff] %vm1129_vm6, %v1502_v16  ;;  %v1426_v3 = vadd.f32 %v2235_v30, %v1425_v58  ;;  %v746_v59 = vadd.f32 %v619_v21, %v3749_v36  ;;  %vm1432_vm15 = vcmp.eq.f32.partialorder %v1431_v54, 8.507059e+37  ;;  %v1434_v27 = vor.u32 1.1754944e-38, %v1433_v22  ;;  %v3757_v16 = vld [vmem:[#allocation22_spill] sm:$0xff] }
 0x182   :  { %1166 = vst.msk [vmem:[#allocation4 + $0x20] sm:$0xff] %vm1129_vm6, %v1082_v19  ;;  %v935_v7 = vmul.f32 %v3305_v55, %v934_v11  ;;  %2242 = vrcp.f32 %v3332_v9  ;;  %v1600_v38 = vld [vmem:[#allocation2 + $0x20] sm:$0xff]  ;;  %v944_v41 = vor.u32 1.1754944e-38, %v943_v48  ;;  %v807_v57 = vadd.f32 %v2789_v62, %v745_v32 }
 0x183   :  { %v1430_v4 = vsel %vm1429_vm14, %v2235_v30, %v1426_v3  ;;  %2244 = vpow2.f32 %v2123_v17  ;;  %vm942_vm2 = vcmp.eq.f32.partialorder %v941_v60, 8.507059e+37  ;;  %v808_v52 = vadd.f32 %v2791_v63, %v746_v59 }
 0x184   :  { %v1435_v43 = vsel %vm1432_vm15, %v1434_v27, %v1430_v4  ;;  %v936_v23 = vadd.f32 %v3305_v55, %v935_v7  ;;  %2246 = vtanh.f32 %v3752_v35  ;;  %v2100_v28 = vmul.f32 -1.442695, %v807_v57 }
 0x185   :  { %1518 = vst.msk [vmem:[#allocation7 + $0x20] sm:$0xff] %vm1129_vm6, %v1435_v43  ;;  %v747_v54 = vadd.f32 %v660_v53, %v3753_v44  ;;  %v1601_v34 = vmul.f32 %v1600_v38, %v3242_v33  ;;  %v748_v30 = vadd.f32 %v701_v56, %v3754_v24  ;;  %v751_v60 = vadd.f32 %v581_v40, %v3755_v0  ;;  %v3762_v40 = vld [vmem:[#allocation23_spill] sm:$0xff] }
 0x186   :  { %v2241_v22 = vpop.eup %2240  ;;  %v940_v26 = vsel %vm3347_vm1, %v3305_v55, %v936_v23  ;;  %2248 = vpow2.f32 %v2100_v28  ;;  %v2116_v12 = vmul.f32 -1.442695, %v808_v52  ;;  %v1294_v10 = vand.u32 2147483647, %v3332_v9 }
 0x187   :  { %v1603_v42 = vld [vmem:[#allocation3 + $0x20] sm:$0xff]  ;;  %v945_v49 = vsel %vm942_vm2, %v944_v41, %v940_v26  ;;  %v3363_v31 = vadd.f32 1.0, %v2241_v22  ;;  %v809_v13 = vadd.f32 %v2807_v51, %v747_v54  ;;  %v810_v55 = vadd.f32 %v2805_v1, %v748_v30 }
 0x188   :  { %v2243_v25 = vpop.eup %2242  ;;  %v3365_v61 = vadd.f32 %v1603_v42, %v1601_v34  ;;  %1135 = vst.msk [vmem:[#allocation2 + $0x28] sm:$0xff] %vm1129_vm6, %v945_v49  ;;  %v1143_v33 = vsub.f32 1.0, %v945_v49  ;;  %v752_v21 = vadd.f32 %v622_v29, %v3756_v37  ;;  %v1296_v8 = vand.u32 2147483648, %v3332_v9 }
 0x189   :  { %v2245_v18 = vpop.eup %2244  ;;  %v1612_v20 = vld [vmem:[#allocation4 + $0x20] sm:$0xff]  ;;  %v1286_v48 = vmul.f32 %v2243_v25, %v3332_v9  ;;  %2250 = vrcp.f32 %v3363_v31  ;;  %v2108_v47 = vmul.f32 -1.442695, %v809_v13  ;;  %v2124_v58 = vmul.f32 -1.442695, %v810_v55 }
 0x18a   :  { %v1613_v15 = vmul.f32 %v1612_v20, %v3365_v61  ;;  %v1151_v2 = vmul.f32 %v3213_v6, %v1143_v33  ;;  %v2247_v39 = vpop.eup %2246  ;;  %v3376_v50 = vadd.f32 1.0, %v2245_v18  ;;  %2252 = vpow2.f32 %v2116_v12 }
 0x18b   :  { %v1287_v14 = vsub.f32 1.0, %v1286_v48  ;;  %2254 = vtanh.f32 %v3757_v16  ;;  %v813_v5 = vadd.f32 %v2789_v62, %v751_v60  ;;  %vm1291_vm3 = vweird.f32 %v2243_v25 }
 0x18c   :  { %1614 = vst.msk [vmem:[#allocation4 + $0x20] sm:$0xff] %vm1129_vm6, %v1613_v15  ;;  %v2249_v6 = vpop.eup %2248  ;;  %v1093_v11 = vand.u32 2147483647, %v3363_v31  ;;  %2256 = vrcp.f32 %v3376_v50  ;;  %vm1290_vm7 = vweird.f32 %v3332_v9  ;;  %vm3386_vm4 = vcmp.eq.f32.partialorder %v1294_v10, 8.507059e+37 }
 0x18d   :  { %1159 = vst.msk [vmem:[#allocation3 + $0x28] sm:$0xff] %vm1129_vm6, %v1151_v2  ;;  %v1288_v19 = vmul.f32 %v2243_v25, %v1287_v14  ;;  %v3390_v17 = vadd.f32 1.0, %v2249_v6  ;;  %2258 = vpow2.f32 %v2108_v47  ;;  %v1095_v32 = vand.u32 2147483648, %v3363_v31  ;;  %vm1292_vm5 = vmor %vm1290_vm7, %vm1291_vm3 }
 0x18e   :  { %2260 = vpow2.f32 %v2124_v58  ;;  %v814_v36 = vadd.f32 %v2791_v63, %v752_v21  ;;  %v1297_v59 = vor.u32 1.1754944e-38, %v1296_v8  ;;  %vm1089_vm8 = vweird.f32 %v3363_v31  ;;  %v663_v21 = vpop.f32.mrf.mxu2 }
 0x18f   :  { %v2251_v45 = vpop.eup %2250  ;;  %v1289_v62 = vadd.f32 %v2243_v25, %v1288_v19  ;;  %v2101_v9 = vmul.f32 -1.442695, %v813_v5  ;;  %vm3396_vm9 = vcmp.eq.f32.partialorder %v1093_v11, 8.507059e+37  ;;  %v1446_v4 = vand.u32 2147483647, %v3376_v50  ;;  %v1620_v35 = vld [vmem:[#allocation2 + $0x28] sm:$0xff] }
 0x190   :  { %v1085_v27 = vmul.f32 %v2251_v45, %v3363_v31  ;;  %v2253_v7 = vpop.eup %2252  ;;  %2262 = vrcp.f32 %v3390_v17  ;;  %vm1090_vm11 = vweird.f32 %v2251_v45  ;;  %v1096_v23 = vor.u32 1.1754944e-38, %v1095_v32 }
 0x191   :  { %v1293_v53 = vsel %vm1292_vm5, %v2243_v25, %v1289_v62  ;;  %v3402_v46 = vpop.eup %2254  ;;  %v3406_v57 = vadd.f32 1.0, %v2253_v7  ;;  %2264 = vtanh.f32 %v3762_v40  ;;  %v2117_v28 = vmul.f32 -1.442695, %v814_v36  ;;  %vm3415_vm13 = vmor %vm1089_vm8, %vm1090_vm11 }
 0x192   :  { %v1298_v63 = vsel %vm3386_vm4, %v1297_v59, %v1293_v53  ;;  %v1086_v41 = vsub.f32 1.0, %v1085_v27  ;;  %v2257_v56 = vpop.eup %2256  ;;  %vm1442_vm10 = vweird.f32 %v3376_v50  ;;  %2266 = vpow2.f32 %v2101_v9 }
 0x193   :  { %1487 = vst.msk [vmem:[#allocation5 + $0x28] sm:$0xff] %vm1129_vm6, %v1298_v63  ;;  %v1495_v43 = vsub.f32 1.0, %v1298_v63  ;;  %v2259_v52 = vpop.eup %2258  ;;  %v1438_v54 = vmul.f32 %v2257_v56, %v3376_v50  ;;  %vm3419_vm12 = vcmp.eq.f32.partialorder %v1446_v4, 8.507059e+37  ;;  %v1448_v30 = vand.u32 2147483648, %v3376_v50 }
 0x194   :  { %v1087_v44 = vmul.f32 %v2251_v45, %v1086_v41  ;;  %v2261_v22 = vpop.eup %2260  ;;  %2268 = vrcp.f32 %v3406_v57  ;;  %v1621_v60 = vmul.f32 %v1620_v35, %v3365_v61  ;;  %v956_v49 = vand.u32 2147483647, %v3390_v17  ;;  %v1623_v20 = vld [vmem:[#allocation3 + $0x28] sm:$0xff]  ;;  %v704_v41 = vpop.f32.mrf.mxu3 }
 0x195   :  { %v1503_v34 = vmul.f32 %v2247_v39, %v1495_v43  ;;  %v1439_v42 = vsub.f32 1.0, %v1438_v54  ;;  %v958_v31 = vand.u32 2147483648, %v3390_v17  ;;  %v3429_v29 = vadd.f32 1.0, %v2259_v52 }
 0x196   :  { %v1088_v0 = vadd.f32 %v2251_v45, %v1087_v44  ;;  %v2263_v12 = vpop.eup %2262  ;;  %v3431_v25 = vadd.f32 1.0, %v2261_v22  ;;  %2270 = vpow2.f32 %v2117_v28  ;;  %vm1443_vm14 = vweird.f32 %v2257_v56 }
 0x197   :  { %1511 = vst.msk [vmem:[#allocation6 + $0x28] sm:$0xff] %vm1129_vm6, %v1503_v34  ;;  %v1440_v13 = vmul.f32 %v2257_v56, %v1439_v42  ;;  %v948_v61 = vmul.f32 %v2263_v12, %v3390_v17  ;;  %v3436_v55 = vpop.eup %2264  ;;  %vm952_vm15 = vweird.f32 %v3390_v17  ;;  %v1309_v48 = vand.u32 2147483647, %v3406_v57  ;;  %vm1444_vm2 = vmor %vm1442_vm10, %vm1443_vm14  ;;  %v3774_v34 = vld [vmem:[#allocation20_spill] sm:$0xff] }
 0x198   :  { %v1092_v33 = vsel %vm3415_vm13, %v2251_v45, %v1088_v0  ;;  %2272 = vrcp.f32 %v3429_v29  ;;  %v2267_v15 = vpop.eup %2266  ;;  %vm953_vm1 = vweird.f32 %v2263_v12  ;;  %v1311_v37 = vand.u32 2147483648, %v3406_v57  ;;  %v3773_v45 = vld [vmem:[#allocation19_spill] sm:$0xff] }
 0x199   :  { %v1097_v18 = vsel %vm3396_vm9, %v1096_v23, %v1092_v33  ;;  %v1441_v2 = vadd.f32 %v2257_v56, %v1440_v13  ;;  %v949_v10 = vsub.f32 1.0, %v948_v61  ;;  %v1449_v14 = vor.u32 1.1754944e-38, %v1448_v30  ;;  %vm3461_vm7 = vmor %vm952_vm15, %vm953_vm1 }
 0x19a   :  { %1167 = vst.msk [vmem:[#allocation4 + $0x28] sm:$0xff] %vm1129_vm6, %v1097_v18  ;;  %v2269_v39 = vpop.eup %2268  ;;  %vm3448_vm3 = vcmp.eq.f32.partialorder %v956_v49, 8.507059e+37  ;;  %v959_v16 = vor.u32 1.1754944e-38, %v958_v31  ;;  %2274 = vrcp.f32 %v3431_v25  ;;  %v3453_v8 = vadd.f32 %v1623_v20, %v1621_v60 }
 0x19b   :  { %v1445_v58 = vsel %vm1444_vm2, %v2257_v56, %v1441_v2  ;;  %v950_v5 = vmul.f32 %v2263_v12, %v949_v10  ;;  %v1301_v6 = vmul.f32 %v2269_v39, %v3406_v57  ;;  %vm1305_vm4 = vweird.f32 %v3406_v57 }
 0x19c   :  { %v2271_v19 = vpop.eup %2270  ;;  %v1450_v11 = vsel %vm3419_vm12, %v1449_v14, %v1445_v58  ;;  %vm3466_vm5 = vcmp.eq.f32.partialorder %v1309_v48, 8.507059e+37  ;;  %v753_v62 = vadd.f32 %v663_v21, %v3773_v45  ;;  %v1312_v59 = vor.u32 1.1754944e-38, %v1311_v37 }
 0x19d   :  { %1519 = vst.msk [vmem:[#allocation7 + $0x28] sm:$0xff] %vm1129_vm6, %v1450_v11  ;;  %v951_v32 = vadd.f32 %v2263_v12, %v950_v5  ;;  %v1302_v36 = vsub.f32 1.0, %v1301_v6  ;;  %v3472_v27 = vadd.f32 1.0, %v2267_v15  ;;  %vm1306_vm8 = vweird.f32 %v2269_v39  ;;  %v3777_v5 = vld [vmem:[#allocation24_spill] sm:$0xff] }
 0x19e   :  { %v2273_v17 = vpop.eup %2272  ;;  %vm1104_vm9 = vweird.f32 %v3429_v29  ;;  %v1108_v9 = vand.u32 2147483647, %v3429_v29  ;;  %v1110_v7 = vand.u32 2147483648, %v3429_v29  ;;  %v3480_v63 = vadd.f32 1.0, %v2271_v19  ;;  %vm1307_vm10 = vmor %vm1305_vm4, %vm1306_vm8 }
 0x19f   :  { %v955_v53 = vsel %vm3461_vm7, %v2263_v12, %v951_v32  ;;  %v1303_v38 = vmul.f32 %v2269_v39, %v1302_v36  ;;  %v1100_v4 = vmul.f32 %v2273_v17, %v3429_v29  ;;  %vm1105_vm11 = vweird.f32 %v2273_v17 }
 0x1a0   :  { %v2275_v56 = vpop.eup %2274  ;;  %v960_v43 = vsel %vm3448_vm3, %v959_v16, %v955_v53  ;;  %v1463_v23 = vand.u32 2147483648, %v3431_v25  ;;  %2276 = vrcp.f32 %v3472_v27  ;;  %vm1457_vm13 = vweird.f32 %v3431_v25  ;;  %vm3503_vm12 = vmor %vm1104_vm9, %vm1105_vm11 }
 0x1a1   :  { %v1632_v40 = vld [vmem:[#allocation4 + $0x28] sm:$0xff]  ;;  %1136 = vst.msk [vmem:[#allocation2 + $0x30] sm:$0xff] %vm1129_vm6, %v960_v43  ;;  %v1144_v28 = vsub.f32 1.0, %v960_v43  ;;  %v1304_v52 = vadd.f32 %v2269_v39, %v1303_v38  ;;  %v1101_v44 = vsub.f32 1.0, %v1100_v4  ;;  %v1453_v54 = vmul.f32 %v2275_v56, %v3431_v25 }
 0x1a2   :  { %v1633_v35 = vmul.f32 %v1632_v40, %v3453_v8  ;;  %v815_v22 = vadd.f32 %v2807_v51, %v753_v62  ;;  %v754_v26 = vadd.f32 %v704_v41, %v3774_v34  ;;  %2278 = vrcp.f32 %v3480_v63 }
 0x1a3   :  { %v1152_v24 = vmul.f32 %v3402_v46, %v1144_v28  ;;  %v1308_v30 = vsel %vm1307_vm10, %v2269_v39, %v1304_v52  ;;  %v1102_v0 = vmul.f32 %v2273_v17, %v1101_v44  ;;  %v1111_v51 = vor.u32 1.1754944e-38, %v1110_v7 }
 0x1a4   :  { %1634 = vst.msk [vmem:[#allocation4 + $0x28] sm:$0xff] %vm1129_vm6, %v1633_v35  ;;  %v1313_v57 = vsel %vm3466_vm5, %v1312_v59, %v1308_v30  ;;  %v1454_v42 = vsub.f32 1.0, %v1453_v54  ;;  %v1461_v49 = vand.u32 2147483647, %v3431_v25  ;;  %vm1109_vm14 = vcmp.eq.f32.partialorder %v1108_v9, 8.507059e+37 }
 0x1a5   :  { %1160 = vst.msk [vmem:[#allocation3 + $0x30] sm:$0xff] %vm1129_vm6, %v1152_v24  ;;  %v1496_v46 = vsub.f32 1.0, %v1313_v57  ;;  %v1103_v12 = vadd.f32 %v2273_v17, %v1102_v0  ;;  %v1464_v31 = vor.u32 1.1754944e-38, %v1463_v23  ;;  %vm1458_vm15 = vweird.f32 %v2275_v56 }
 0x1a6   :  { %v2277_v33 = vpop.eup %2276  ;;  %1488 = vst.msk [vmem:[#allocation5 + $0x30] sm:$0xff] %vm1129_vm6, %v1313_v57  ;;  %v1455_v13 = vmul.f32 %v2275_v56, %v1454_v42  ;;  %v2109_v29 = vmul.f32 -1.442695, %v815_v22  ;;  %v816_v61 = vadd.f32 %v2805_v1, %v754_v26  ;;  %vm967_vm1 = vweird.f32 %v3472_v27  ;;  %vm1459_vm2 = vmor %vm1457_vm13, %vm1458_vm15 }
 0x1a7   :  { %v1504_v18 = vmul.f32 %v3436_v55, %v1496_v46  ;;  %v1107_v20 = vsel %vm3503_vm12, %v2273_v17, %v1103_v12  ;;  %v963_v48 = vmul.f32 %v2277_v33, %v3472_v27  ;;  %v971_v10 = vand.u32 2147483647, %v3472_v27 }
 0x1a8   :  { %v1112_v15 = vsel %vm1109_vm14, %v1111_v51, %v1107_v20  ;;  %v1456_v2 = vadd.f32 %v2275_v56, %v1455_v13  ;;  %v973_v37 = vand.u32 2147483648, %v3472_v27  ;;  %v2279_v21 = vpop.eup %2278  ;;  %v1640_v39 = vld [vmem:[#allocation2 + $0x30] sm:$0xff]  ;;  %vm968_vm3 = vweird.f32 %v2277_v33 }
 0x1a9   :  { %1512 = vst.msk [vmem:[#allocation6 + $0x30] sm:$0xff] %vm1129_vm6, %v1504_v18  ;;  %v964_v1 = vsub.f32 1.0, %v963_v48  ;;  %2280 = vpow2.f32 %v2109_v29  ;;  %v2125_v55 = vmul.f32 -1.442695, %v816_v61  ;;  %vm1462_vm7 = vcmp.eq.f32.partialorder %v1461_v49, 8.507059e+37  ;;  %vm969_vm4 = vmor %vm967_vm1, %vm968_vm3 }
 0x1aa   :  { %1168 = vst.msk [vmem:[#allocation4 + $0x30] sm:$0xff] %vm1129_vm6, %v1112_v15  ;;  %v1460_v14 = vsel %vm1459_vm2, %v2275_v56, %v1456_v2  ;;  %v1316_v47 = vmul.f32 %v2279_v21, %v3480_v63  ;;  %v1641_v6 = vmul.f32 %v1640_v39, %v3453_v8  ;;  %v974_v25 = vor.u32 1.1754944e-38, %v973_v37  ;;  %v3778_v8 = vld [vmem:[#allocation25_spill] sm:$0xff] }
 0x1ab   :  { %v1465_v16 = vsel %vm1462_vm7, %v1464_v31, %v1460_v14  ;;  %v965_v58 = vmul.f32 %v2277_v33, %v964_v1  ;;  %2282 = vpow2.f32 %v2125_v55  ;;  %vm972_vm5 = vcmp.eq.f32.partialorder %v971_v10, 8.507059e+37  ;;  %v1679_v10 = vld [vmem:[#allocation4 + $0x18] sm:$0xff]  ;;  %v1677_v1 = vld [vmem:[#allocation4 + $0x8] sm:$0xff] }
 0x1ac   :  { %2284 = vtanh.f32 %v3777_v5  ;;  %v1643_v19 = vld [vmem:[#allocation3 + $0x30] sm:$0xff]  ;;  %1520 = vst.msk [vmem:[#allocation7 + $0x30] sm:$0xff] %vm1129_vm6, %v1465_v16  ;;  %v1317_v11 = vsub.f32 1.0, %v1316_v47  ;;  %v1326_v3 = vand.u32 2147483648, %v3480_v63  ;;  %vm1321_vm8 = vweird.f32 %v2279_v21  ;;  %v1566_v16 = vld [vmem:[#allocation5 + $0x28] sm:$0xff] }
 0x1ad   :  { %v966_v50 = vadd.f32 %v2277_v33, %v965_v58  ;;  %v3529_v45 = vadd.f32 %v1643_v19, %v1641_v6  ;;  %v1324_v32 = vand.u32 2147483647, %v3480_v63  ;;  %2286 = vtanh.f32 %v3778_v8  ;;  %v1546_v61 = vld [vmem:[#allocation5 + $0x30] sm:$0xff]  ;;  %v1676_v19 = vld [vmem:[#allocation4] sm:$0xff] }
 0x1ae   :  { %v1318_v62 = vmul.f32 %v2279_v21, %v1317_v11  ;;  %vm1320_vm9 = vweird.f32 %v3480_v63  ;;  %v1327_v4 = vor.u32 1.1754944e-38, %v1326_v3  ;;  %v1696_v11 = vrot.slane %v1679_v10, 4  ;;  %v1569_v3 = vld [vmem:[#allocation6 + $0x28] sm:$0xff] }
 0x1af   :  { %v2281_v36 = vpop.eup %2280  ;;  %v970_v59 = vsel %vm969_vm4, %v2277_v33, %v966_v50  ;;  %vm1322_vm11 = vmor %vm1320_vm9, %vm1321_vm8  ;;  %vm1325_vm10 = vcmp.eq.f32.partialorder %v1324_v32, 8.507059e+37 }
 0x1b0   :  { %v975_v17 = vsel %vm972_vm5, %v974_v25, %v970_v59  ;;  %v1319_v9 = vadd.f32 %v2279_v21, %v1318_v62  ;;  %v1008_v27 = vadd.f32 1.0, %v2281_v36  ;;  %v1549_v2 = vld [vmem:[#allocation6 + $0x30] sm:$0xff]  ;;  %v1698_v62 = vrot.slane %v1677_v1, 4  ;;  %v1576_v36 = vld [vmem:[#allocation7 + $0x28] sm:$0xff] }
 0x1b1   :  { %v2283_v7 = vpop.eup %2282  ;;  %v1652_v53 = vld [vmem:[#allocation4 + $0x30] sm:$0xff]  ;;  %1137 = vst.msk [vmem:[#allocation2 + $0x38] sm:$0xff] %vm1129_vm6, %v975_v17  ;;  %v1145_v38 = vsub.f32 1.0, %v975_v17  ;;  %v1686_v59 = vrot.slane %v1676_v19, 4 }
 0x1b2   :  { %v2285_v41 = vpop.eup %2284  ;;  %v1653_v56 = vmul.f32 %v1652_v53, %v3529_v45  ;;  %v1323_v40 = vsel %vm1322_vm11, %v2279_v21, %v1319_v9  ;;  %2288 = vrcp.f32 %v1008_v27  ;;  %v1361_v63 = vadd.f32 1.0, %v2283_v7  ;;  %v1678_v25 = vld [vmem:[#allocation4 + $0x10] sm:$0xff] }
 0x1b3   :  { %v1153_v43 = vmul.f32 %v2285_v41, %v1145_v38  ;;  %v1328_v23 = vsel %vm1325_vm10, %v1327_v4, %v1323_v40  ;;  %v2287_v28 = vpop.eup %2286  ;;  %v1125_v22 = vand.u32 2147483648, %v1008_v27  ;;  %vm1119_vm13 = vweird.f32 %v1008_v27  ;;  %v1556_v47 = vld [vmem:[#allocation7 + $0x30] sm:$0xff]  ;;  %v1589_v4 = vld [vmem:[#allocation6 + $0x20] sm:$0xff] }
 0x1b4   :  { %1654 = vst.msk [vmem:[#allocation4 + $0x30] sm:$0xff] %vm1129_vm6, %v1653_v56  ;;  %v1497_v35 = vsub.f32 1.0, %v1328_v23  ;;  %2290 = vrcp.f32 %v1361_v63  ;;  %v1123_v26 = vand.u32 2147483647, %v1008_v27  ;;  %v1478_v12 = vand.u32 2147483648, %v1361_v63  ;;  %v3779_v56 = vld [vmem:[#allocation11_spill] sm:$0xff] }
 0x1b5   :  { %1161 = vst.msk [vmem:[#allocation3 + $0x38] sm:$0xff] %vm1129_vm6, %v1153_v43  ;;  %v1126_v60 = vor.u32 1.1754944e-38, %v1125_v22  ;;  %v1476_v29 = vand.u32 2147483647, %v1361_v63  ;;  %vm1472_vm2 = vweird.f32 %v1361_v63  ;;  %v1684_v8 = vrot.slane %v1678_v25, 4  ;;  %v1596_v43 = vld [vmem:[#allocation7 + $0x20] sm:$0xff] }
 0x1b6   :  { %1489 = vst.msk [vmem:[#allocation5 + $0x38] sm:$0xff] %vm1129_vm6, %v1328_v23  ;;  %v1505_v52 = vmul.f32 %v2287_v28, %v1497_v35  ;;  %vm1124_vm15 = vcmp.eq.f32.partialorder %v1123_v26, 8.507059e+37  ;;  %v1479_v21 = vor.u32 1.1754944e-38, %v1478_v12  ;;  %v1699_v17 = vsel %vm24_vm0, %v1679_v10, %v1698_v62  ;;  %v1606_v23 = vld [vmem:[#allocation5 + $0x18] sm:$0xff] }
 0x1b7   :  { %vm1477_vm7 = vcmp.eq.f32.partialorder %v1476_v29, 8.507059e+37  ;;  %v1697_v53 = vsel %vm24_vm0, %v1696_v11, %v1677_v1  ;;  %v1707_v40 = vperm.slane %v1699_v17, %v3779_v56  ;;  %v1687_v35 = vsel %vm24_vm0, %v1678_v25, %v1686_v59 }
 0x1b8   :  { %v2289_v44 = vpop.eup %2288  ;;  %1513 = vst.msk [vmem:[#allocation6 + $0x38] sm:$0xff] %vm1129_vm6, %v1505_v52  ;;  %v1660_v20 = vld [vmem:[#allocation2 + $0x38] sm:$0xff]  ;;  %v1703_v28 = vperm.slane %v1697_v53, %v3779_v56 }
 0x1b9   :  { %v1115_v54 = vmul.f32 %v2289_v44, %v1008_v27  ;;  %vm1120_vm12 = vweird.f32 %v2289_v44  ;;  %v1661_v55 = vmul.f32 %v1660_v20, %v3529_v45  ;;  %v1586_v45 = vld [vmem:[#allocation5 + $0x20] sm:$0xff] }
 0x1ba   :  { %v2291_v24 = vpop.eup %2290  ;;  %vm1121_vm14 = vmor %vm1119_vm13, %vm1120_vm12 }
 0x1bb   :  { %v1116_v34 = vsub.f32 1.0, %v1115_v54  ;;  %v1468_v0 = vmul.f32 %v2291_v24, %v1361_v63  ;;  %vm1473_vm1 = vweird.f32 %v2291_v24  ;;  %v1685_v63 = vsel %vm24_vm0, %v1684_v8, %v1676_v19  ;;  %v1682_v26 = vld [vmem:[#allocation4 + $0x30] sm:$0xff]  ;;  %v1649_v19 = vld [vmem:[#allocation6 + $0x8] sm:$0xff] }
 0x1bc   :  { %v1663_v37 = vld [vmem:[#allocation3 + $0x38] sm:$0xff]  ;;  %vm1474_vm3 = vmor %vm1472_vm2, %vm1473_vm1 }
 0x1bd   :  { %v1117_v30 = vmul.f32 %v2289_v44, %v1116_v34  ;;  %v1527_v57 = vld [vmem:[#allocation5 + $0x38] sm:$0xff]  ;;  %v1469_v49 = vsub.f32 1.0, %v1468_v0  ;;  %v1664_v50 = vadd.f32 %v1663_v37, %v1661_v55  ;;  %v1681_v0 = vld [vmem:[#allocation4 + $0x28] sm:$0xff] }
 0x1be   :  { %v1528_v51 = vmul.f32 0.0, %v1527_v57  ;;  %v1609_v34 = vld [vmem:[#allocation6 + $0x18] sm:$0xff]  ;;  %v1695_v57 = vperm.slane %v1687_v35, %v3779_v56  ;;  %v1646_v37 = vld [vmem:[#allocation5 + $0x8] sm:$0xff] }
 0x1bf   :  { %v1118_v42 = vadd.f32 %v2289_v44, %v1117_v30  ;;  %v1530_v46 = vld [vmem:[#allocation6 + $0x38] sm:$0xff]  ;;  %v1470_v13 = vmul.f32 %v2291_v24, %v1469_v49  ;;  %v1680_v30 = vld [vmem:[#allocation4 + $0x20] sm:$0xff]  ;;  %v1626_v49 = vld [vmem:[#allocation5 + $0x10] sm:$0xff] }
 0x1c0   :  { %v1531_v31 = vadd.f32 %v1530_v46, %v1528_v51  ;;  %v1691_v51 = vperm.slane %v1685_v63, %v3779_v56  ;;  %v1732_v46 = vrot.slane %v1703_v28, 4  ;;  %v1710_v29 = vrot.slane %v1680_v30, 4  ;;  %v1667_v63 = vld [vmem:[#allocation6] sm:$0xff] }
 0x1c1   :  { %v1122_v33 = vsel %vm1121_vm14, %v2289_v44, %v1118_v42  ;;  %v1471_v15 = vadd.f32 %v2291_v24, %v1470_v13  ;;  %v1616_v42 = vld [vmem:[#allocation7 + $0x18] sm:$0xff]  ;;  %v1629_v13 = vld [vmem:[#allocation6 + $0x10] sm:$0xff]  ;;  %v1746_v10 = vrot.slane %v1695_v57, 4 }
 0x1c2   :  { %v1127_v18 = vsel %vm1124_vm15, %v1126_v60, %v1122_v33  ;;  %v1547_v48 = vmul.f32 %v1546_v61, %v1531_v31  ;;  %v1744_v60 = vrot.slane %v1707_v40, 4  ;;  %v1722_v61 = vrot.slane %v1681_v0, 4 }
 0x1c3   :  { %1169 = vst.msk [vmem:[#allocation4 + $0x38] sm:$0xff] %vm1129_vm6, %v1127_v18  ;;  %v1475_v14 = vsel %vm1474_vm3, %v2291_v24, %v1471_v15  ;;  %v1711_v1 = vsel %vm24_vm0, %v1682_v26, %v1710_v29  ;;  %v1747_v17 = vsel %vm24_vm0, %v1707_v40, %v1746_v10 }
 0x1c4   :  { %v1550_v39 = vadd.f32 %v1549_v2, %v1547_v48  ;;  %v1480_v58 = vsel %vm1477_vm7, %v1479_v21, %v1475_v14  ;;  %v1745_v15 = vsel %vm24_vm0, %v1744_v60, %v1695_v57  ;;  %v1734_v2 = vrot.slane %v1691_v51, 4  ;;  %v1636_v21 = vld [vmem:[#allocation7 + $0x10] sm:$0xff] }
 0x1c5   :  { %1521 = vst.msk [vmem:[#allocation7 + $0x38] sm:$0xff] %vm1129_vm6, %v1480_v58 }
 0x1c6   :  { %v1557_v5 = vmul.f32 %v1556_v47, %v1550_v39  ;;  %v1567_v6 = vmul.f32 %v1566_v16, %v1550_v39  ;;  %v1733_v47 = vsel %vm24_vm0, %v1732_v46, %v1691_v51 }
 0x1c8   :  { %1558 = vst.msk [vmem:[#allocation7 + $0x30] sm:$0xff] %vm1129_vm6, %v1557_v5  ;;  %v1570_v32 = vadd.f32 %v1569_v3, %v1567_v6 }
 0x1ca   :  { %v1670_v9 = vld [vmem:[#allocation4 + $0x38] sm:$0xff]  ;;  %v1577_v27 = vmul.f32 %v1576_v36, %v1570_v32  ;;  %v1587_v7 = vmul.f32 %v1586_v45, %v1570_v32  ;;  %v1735_v32 = vsel %vm24_vm0, %v1703_v28, %v1734_v2 }
 0x1cb   :  { %v1671_v38 = vmul.f32 %v1670_v9, %v1664_v50  ;;  %v3780_v50 = vld [vmem:[#allocation12_spill] sm:$0xff]  ;;  %v1665_v9 = vld [vmem:[#allocation5] sm:$0xff] }
 0x1cc   :  { %1578 = vst.msk [vmem:[#allocation7 + $0x28] sm:$0xff] %vm1129_vm6, %v1577_v27  ;;  %v1590_v41 = vadd.f32 %v1589_v4, %v1587_v7  ;;  %v1536_v52 = vld [vmem:[#allocation7 + $0x38] sm:$0xff]  ;;  %v1751_v3 = vperm.slane %v1745_v15, %v3780_v50  ;;  %v1656_v27 = vld [vmem:[#allocation7 + $0x8] sm:$0xff]  ;;  %v1739_v40 = vperm.slane %v1733_v47, %v3780_v50 }
 0x1cd   :  { %1672 = vst.msk [vmem:[#allocation4 + $0x38] sm:$0xff] %vm1129_vm6, %v1671_v38  ;;  %v1537_v22 = vmul.f32 %v1536_v52, %v1531_v31  ;;  %v1708_v31 = vrot.slane %v1682_v26, 4  ;;  %v1719_v38 = vperm.slane %v1711_v1, %v3779_v56  ;;  %v1673_v26 = vld [vmem:[#allocation7] sm:$0xff] }
 0x1ce   :  { %v1597_v44 = vmul.f32 %v1596_v43, %v1590_v41  ;;  %v1607_v54 = vmul.f32 %v1606_v23, %v1590_v41  ;;  %v1782_v29 = vrot.slane %v1739_v40, 4 }
 0x1cf   :  { %1538 = vst.msk [vmem:[#allocation7 + $0x38] sm:$0xff] %vm1129_vm6, %v1537_v22  ;;  %v1810_v20 = vld [vmem:[#allocation7 + $0x30] sm:$0xff]  ;;  %v1709_v6 = vsel %vm24_vm0, %v1708_v31, %v1680_v30  ;;  %v1743_v22 = vperm.slane %v1735_v32, %v3780_v50  ;;  %v1770_v2 = vrot.slane %v1719_v38, 4 }
 0x1d0   :  { %v1610_v24 = vadd.f32 %v1609_v34, %v1607_v54  ;;  %1598 = vst.msk [vmem:[#allocation7 + $0x20] sm:$0xff] %vm1129_vm6, %v1597_v44  ;;  %v1836_v11 = vrot.slane %v1810_v20, 4  ;;  %v1715_v4 = vperm.slane %v1709_v6, %v3779_v56  ;;  %v3582_v34 = vperm.slane %v1747_v17, %v3780_v50 }
 0x1d2   :  { %v1617_v12 = vmul.f32 %v1616_v42, %v1610_v24  ;;  %v1627_v33 = vmul.f32 %v1626_v49, %v1610_v24  ;;  %v1758_v57 = vrot.slane %v1715_v4, 4  ;;  %v1790_v42 = vrot.slane %v1751_v3, 4 }
 0x1d3   :  { %v1809_v39 = vld [vmem:[#allocation7 + $0x28] sm:$0xff] }
 0x1d4   :  { %v1630_v18 = vadd.f32 %v1629_v13, %v1627_v33  ;;  %1618 = vst.msk [vmem:[#allocation7 + $0x18] sm:$0xff] %vm1129_vm6, %v1617_v12  ;;  %v1683_v48 = vld [vmem:[#allocation4 + $0x38] sm:$0xff]  ;;  %v1850_v8 = vrot.slane %v1809_v39, 4 }
 0x1d5   :  { %v1720_v55 = vrot.slane %v1683_v48, 4  ;;  %v1723_v14 = vsel %vm24_vm0, %v1683_v48, %v1722_v61  ;;  %v1786_v61 = vrot.slane %v1743_v22, 4 }
 0x1d6   :  { %v1647_v16 = vmul.f32 %v1646_v37, %v1630_v18  ;;  %v1637_v58 = vmul.f32 %v1636_v21, %v1630_v18  ;;  %v3562_v5 = vperm.slane %v1723_v14, %v3779_v56  ;;  %v1811_v45 = vld [vmem:[#allocation7 + $0x38] sm:$0xff]  ;;  %v1794_v18 = vrot.slane %v3582_v34, 4 }
 0x1d7   :  { %v1808_v25 = vld [vmem:[#allocation7 + $0x20] sm:$0xff]  ;;  %v1721_v62 = vsel %vm24_vm0, %v1720_v55, %v1681_v0  ;;  %v1848_v53 = vrot.slane %v1811_v45, 4  ;;  %v1851_v54 = vsel %vm24_vm0, %v1811_v45, %v1850_v8 }
 0x1d8   :  { %1638 = vst.msk [vmem:[#allocation7 + $0x10] sm:$0xff] %vm1129_vm6, %v1637_v58  ;;  %v1650_v36 = vadd.f32 %v1649_v19, %v1647_v16  ;;  %v1768_v59 = vrot.slane %v3562_v5, 4  ;;  %v1837_v7 = vsel %vm24_vm0, %v1836_v11, %v1808_v25  ;;  %v1838_v23 = vrot.slane %v1808_v25, 4 }
 0x1d9   :  { %v1727_v35 = vperm.slane %v1721_v62, %v3779_v56  ;;  %v1849_v28 = vsel %vm24_vm0, %v1848_v53, %v1809_v39  ;;  %v1843_v24 = vperm.slane %v1837_v7, %v3779_v56  ;;  %v3589_v12 = vperm.slane %v1851_v54, %v3779_v56 }
 0x1da   :  { %v1657_v41 = vmul.f32 %v1656_v27, %v1650_v36  ;;  %v1666_v43 = vmul.f32 %v1665_v9, %v1650_v36  ;;  %v1769_v52 = vsel %vm24_vm0, %v1768_v59, %v1719_v38  ;;  %v1855_v30 = vperm.slane %v1849_v28, %v3779_v56 }
 0x1db   :  { %v1775_v0 = vperm.slane %v1769_v52, %v3780_v50  ;;  %v1839_v51 = vsel %vm24_vm0, %v1810_v20, %v1838_v23  ;;  %v1756_v49 = vrot.slane %v1727_v35, 4  ;;  %v1807_v46 = vld [vmem:[#allocation7 + $0x18] sm:$0xff]  ;;  %v1759_v31 = vsel %vm24_vm0, %v1727_v35, %v1758_v57 }
 0x1dc   :  { %1658 = vst.msk [vmem:[#allocation7 + $0x8] sm:$0xff] %vm1129_vm6, %v1657_v41  ;;  %v1668_v44 = vadd.f32 %v1667_v63, %v1666_v43  ;;  %v1884_v48 = vrot.slane %v1855_v30, 4  ;;  %v3596_v20 = vperm.slane %v1839_v51, %v3779_v56  ;;  %v1886_v15 = vrot.slane %v1843_v24, 4 }
 0x1dd   :  { %v1788_v33 = vrot.slane %v1775_v0, 4  ;;  %v1791_v13 = vsel %vm24_vm0, %v1775_v0, %v1790_v42  ;;  %v1824_v10 = vrot.slane %v1807_v46, 4  ;;  %v1757_v21 = vsel %vm24_vm0, %v1756_v49, %v1715_v4 }
 0x1de   :  { %v1674_v60 = vmul.f32 %v1673_v26, %v1668_v44  ;;  %1801 = vst.msk [vmem:[#allocation8 + $0x28] sm:$0xff] %vm1129_vm6, %v1791_v13  ;;  %v1767_v39 = vperm.slane %v1759_v31, %v3780_v50  ;;  %v1885_v14 = vsel %vm24_vm0, %v1884_v48, %v1843_v24  ;;  %v1896_v47 = vrot.slane %v3589_v12, 4 }
 0x1df   :  { %v1789_v37 = vsel %vm24_vm0, %v1788_v33, %v1751_v3  ;;  %v1806_v55 = vld [vmem:[#allocation7 + $0x10] sm:$0xff]  ;;  %v1763_v16 = vperm.slane %v1757_v21, %v3780_v50  ;;  %v1771_v58 = vsel %vm24_vm0, %v3562_v5, %v1770_v2  ;;  %v1887_v27 = vsel %vm24_vm0, %v1855_v30, %v1886_v15 }
 0x1e0   :  { %1675 = vst.msk [vmem:[#allocation7] sm:$0xff] %vm1129_vm6, %v1674_v60  ;;  %v1784_v25 = vrot.slane %v1767_v39, 4  ;;  %v1787_v11 = vsel %vm24_vm0, %v1767_v39, %v1786_v61  ;;  %v1779_v36 = vperm.slane %v1771_v58, %v3780_v50  ;;  %v1812_v45 = vrot.slane %v1806_v55, 4 }
 0x1e1   :  { %1800 = vst.msk [vmem:[#allocation8 + $0x20] sm:$0xff] %vm1129_vm6, %v1789_v37  ;;  %v1780_v62 = vrot.slane %v1763_v16, 4  ;;  %v1783_v32 = vsel %vm24_vm0, %v1763_v16, %v1782_v29  ;;  %v1897_v5 = vsel %vm24_vm0, %v1896_v47, %v3596_v20  ;;  %v1891_v41 = vperm.slane %v1885_v14, %v3780_v50 }
 0x1e2   :  { %1799 = vst.msk [vmem:[#allocation8 + $0x18] sm:$0xff] %vm1129_vm6, %v1787_v11  ;;  %v1785_v59 = vsel %vm24_vm0, %v1784_v25, %v1743_v22  ;;  %v1792_v53 = vrot.slane %v1779_v36, 4  ;;  %v1795_v43 = vsel %vm24_vm0, %v1779_v36, %v1794_v18  ;;  %v1903_v63 = vperm.slane %v1897_v5, %v3780_v50 }
 0x1e3   :  { %v1805_v1 = vld [vmem:[#allocation7 + $0x8] sm:$0xff]  ;;  %1797 = vst.msk [vmem:[#allocation8 + $0x8] sm:$0xff] %vm1129_vm6, %v1783_v32  ;;  %v1781_v7 = vsel %vm24_vm0, %v1780_v62, %v1739_v40  ;;  %v1895_v40 = vperm.slane %v1887_v27, %v3780_v50  ;;  %v1908_v30 = vrot.slane %v1891_v41, 4  ;;  %v1898_v31 = vrot.slane %v3596_v20, 4 }
 0x1e4   :  { %v1825_v6 = vsel %vm24_vm0, %v1824_v10, %v1805_v1  ;;  %v1826_v19 = vrot.slane %v1805_v1, 4  ;;  %1798 = vst.msk [vmem:[#allocation8 + $0x10] sm:$0xff] %vm1129_vm6, %v1785_v59  ;;  %v1793_v28 = vsel %vm24_vm0, %v1792_v53, %v3582_v34  ;;  %v1916_v34 = vrot.slane %v1903_v63, 4 }
 0x1e5   :  { %v1831_v3 = vperm.slane %v1825_v6, %v3779_v56  ;;  %1796 = vst.msk [vmem:[#allocation8] sm:$0xff] %vm1129_vm6, %v1781_v7  ;;  %v1912_v49 = vrot.slane %v1895_v40, 4  ;;  %v1899_v48 = vsel %vm24_vm0, %v3589_v12, %v1898_v31 }
 0x1e6   :  { %v1827_v8 = vsel %vm24_vm0, %v1807_v46, %v1826_v19  ;;  %1803 = vst.msk [vmem:[#allocation8 + $0x38] sm:$0xff] %vm1129_vm6, %v1795_v43  ;;  %v1907_v21 = vperm.slane %v1899_v48, %v3780_v50 }
 0x1e7   :  { %v1804_v17 = vld [vmem:[#allocation7] sm:$0xff]  ;;  %v1835_v9 = vperm.slane %v1827_v8, %v3779_v56  ;;  %v1860_v35 = vrot.slane %v1831_v3, 4  ;;  %1802 = vst.msk [vmem:[#allocation8 + $0x30] sm:$0xff] %vm1129_vm6, %v1793_v28  ;;  %vm1956_vm6 = vcmask 523520  }
 0x1e8   :  { %v1813_v38 = vsel %vm24_vm0, %v1812_v45, %v1804_v17  ;;  %v1814_v4 = vrot.slane %v1804_v17, 4  ;;  %v1920_v20 = vrot.slane %v1907_v21, 4 }
 0x1e9   :  { %v1819_v23 = vperm.slane %v1813_v38, %v3779_v56  ;;  %v1872_v22 = vrot.slane %v1835_v9, 4 }
 0x1ea   :  { %v1815_v52 = vsel %vm24_vm0, %v1806_v55, %v1814_v4 }
 0x1eb   :  { %v1861_v44 = vsel %vm24_vm0, %v1860_v35, %v1819_v23  ;;  %v1823_v54 = vperm.slane %v1815_v52, %v3779_v56  ;;  %v1862_v26 = vrot.slane %v1819_v23, 4 }
 0x1ec   :  { %v1867_v24 = vperm.slane %v1861_v44, %v3780_v50 }
 0x1ed   :  { %v1873_v0 = vsel %vm24_vm0, %v1872_v22, %v1823_v54  ;;  %v1863_v57 = vsel %vm24_vm0, %v1831_v3, %v1862_v26  ;;  %v1874_v33 = vrot.slane %v1823_v54, 4 }
 0x1ee   :  { %v1909_v60 = vsel %vm24_vm0, %v1908_v30, %v1867_v24  ;;  %v1879_v51 = vperm.slane %v1873_v0, %v3780_v50  ;;  %v1871_v42 = vperm.slane %v1863_v57, %v3780_v50  ;;  %v1910_v13 = vrot.slane %v1867_v24, 4 }
 0x1ef   :  { %1932 = vrot.lane.b32.xlu0 %v1909_v60, %s2320_s2  ;;  %v1875_v18 = vsel %vm24_vm0, %v1835_v9, %v1874_v33 }
 0x1f0   :  { %v1917_v56 = vsel %vm24_vm0, %v1916_v34, %v1879_v51  ;;  %v1913_v46 = vsel %vm24_vm0, %v1912_v49, %v1871_v42  ;;  %v1918_v29 = vrot.slane %v1879_v51, 4  ;;  %v1914_v61 = vrot.slane %v1871_v42, 4 }
 0x1f1   :  { %1940 = vrot.lane.b32.xlu2 %v1917_v56, %s2320_s2  ;;  %1936 = vrot.lane.b32.xlu1 %v1913_v46, %s2320_s2  ;;  %v1911_v15 = vsel %vm24_vm0, %v1891_v41, %v1910_v13  ;;  %v1883_v37 = vperm.slane %v1875_v18, %v3780_v50 }
 0x1f2   :  { %v1919_v2 = vsel %vm24_vm0, %v1903_v63, %v1918_v29  ;;  %v1915_v10 = vsel %vm24_vm0, %v1895_v40, %v1914_v61 }
 0x1f3   :  { %v1922_v39 = vrot.slane %v1883_v37, 4  ;;  %v1921_v1 = vsel %vm24_vm0, %v1920_v20, %v1883_v37 }
 0x1f5   :  { %v1923_v12 = vsel %vm24_vm0, %v1907_v21, %v1922_v39 }
 0x1f7   :  { %1934 = vrot.lane.b32.xlu0 %v1911_v15, %s2320_s2 }
 0x1f9   :  { %1942 = vrot.lane.b32.xlu2 %v1919_v2, %s2320_s2  ;;  %1938 = vrot.lane.b32.xlu1 %v1915_v10, %s2320_s2 }
 0x1ff   :  { %1944 = vrot.lane.b32.xlu0 %v1921_v1, %s2320_s2 }
 0x201   :  { %1946 = vrot.lane.b32.xlu1 %v1923_v12, %s2320_s2 }
 0x24b   :  { %v1941_v55 = vpop.permute.xlu2 %1940 }
 0x24c   :  { %1961 = vst.msk [vmem:[#allocation8 + $0x20] sm:$0xff] %vm1956_vm6, %v1941_v55 }
 0x253   :  { %v1943_v14 = vpop.permute.xlu2 %1942 }
 0x254   :  { %1962 = vst.msk [vmem:[#allocation8 + $0x28] sm:$0xff] %vm1956_vm6, %v1943_v14 }
 0x261   :  { %v1933_v47 = vpop.permute.xlu0 %1932 }
 0x262   :  { %1957 = vst.msk [vmem:[#allocation8] sm:$0xff] %vm1956_vm6, %v1933_v47 }
 0x263   :  { %v1937_v50 = vpop.permute.xlu1 %1936 }
 0x264   :  { %1959 = vst.msk [vmem:[#allocation8 + $0x10] sm:$0xff] %vm1956_vm6, %v1937_v50 }
 0x269   :  { %v1935_v16 = vpop.permute.xlu0 %1934 }
 0x26a   :  { %1958 = vst.msk [vmem:[#allocation8 + $0x8] sm:$0xff] %vm1956_vm6, %v1935_v16 }
 0x26b   :  { %v1939_v58 = vpop.permute.xlu1 %1938 }
 0x26c   :  { %1960 = vst.msk [vmem:[#allocation8 + $0x18] sm:$0xff] %vm1956_vm6, %v1939_v58 }
 0x271   :  { %v1945_v6 = vpop.permute.xlu0 %1944 }
 0x272   :  { %1963 = vst.msk [vmem:[#allocation8 + $0x30] sm:$0xff] %vm1956_vm6, %v1945_v6 }
 0x273   :  { %v1947_v19 = vpop.permute.xlu1 %1946 }
 0x274   :  { %1964 = vst.msk [vmem:[#allocation8 + $0x38] sm:$0xff] %vm1956_vm6, %v1947_v19 }
 0x275   :  { %1977 = dma.vmem_to_hbm [thread:$0]  %s1970_s14, 1024, %s1972_s17, [#allocation9], %s2322_s18, %s2322_s18, %s2323_s19  }
 0x276   :  { %2316 = dma.done.wait [#allocation9], 1024  }
 0x277   :  { %2317 = vsyncadd [#allocation9], 4294966272 }
 0x278   :  { %1982 = vsyncpa [#allocation9], 1 }

</bundles_post_ra>
